<compile_context>
chip_gen: v7x
topology: tpu7x:2x2x1
jax: 0.10.0
libtpu: 0.0.40
codegen_flags: <defaults>
</compile_context>

<pallas_src>
import functools

import jax
import jax.numpy as jnp
from jax.experimental import pallas as pl
from jax.experimental.pallas import tpu as pltpu


def appreciator_kernel(p_ref, w1_ref, b1_ref, w2_ref, b2_ref, o_ref,
                       *, H1, W1, H2, W2):
    """One batch element per grid step.

    p_ref : (1, H1*W1, KH1*KW1*Cin) bf16 - conv1 im2col patches
    w1_ref: (KH1*KW1*Cin, C1)       bf16 - conv1 weights (BN scale folded in)
    b1_ref: (1, C1)                 f32  - folded conv bias + BN shift
    w2_ref: (KH2, KW2*C1, C2)       bf16 - conv2 weights, width taps fused
    b2_ref: (1, C2)                 f32
    o_ref : (1, H2*W2, C2)          f32
    """
    C1 = w1_ref.shape[1]
    KH2 = w2_ref.shape[0]
    KW2 = w2_ref.shape[1] // C1
    C2 = w2_ref.shape[2]

    # ---- conv1: single K=147 bf16 matmul on the MXU, f32 accumulate. ----
    h1 = jnp.dot(p_ref[0], w1_ref[...], preferred_element_type=jnp.float32)
    h1 = jnp.maximum(h1 + b1_ref[0, :], 0.0)           # folded BN + ReLU (f32)
    h1 = h1.astype(jnp.bfloat16).reshape(H1, W1, C1)    # bf16 operand for conv2

    # ---- conv2: fuse the KW width taps into the contraction (K = KW2*C1). ----
    acc = jnp.zeros((H2 * W2, C2), jnp.float32)
    for kh in range(KH2):                               # static, KH2 = 4
        rows = h1[kh:kh + H2]                           # (H2, W1, C1)
        fused = jnp.concatenate(                        # (H2, W2, KW2*C1)
            [rows[:, kw:kw + W2, :] for kw in range(KW2)], axis=-1)
        acc = acc + jnp.dot(fused.reshape(H2 * W2, KW2 * C1), w2_ref[kh],
                            preferred_element_type=jnp.float32)

    o_ref[0] = jnp.maximum(acc + b2_ref[0, :], 0.0)     # folded BN + ReLU (f32)


def appreciator_net(x_nchw, params):
    """x_nchw: (N, 3, H, W) float32 -> (N, 128, H-9, W-9) float32."""
    w1, s1, b1, w2, s2, b2 = params
    N, C, H, W = x_nchw.shape
    k1, c1 = w1.shape[0], w1.shape[3]
    k2, c2 = w2.shape[0], w2.shape[3]
    H1, W1 = H - k1 + 1, W - k1 + 1
    H2, W2 = H1 - k2 + 1, W1 - k2 + 1
    P1, P2 = H1 * W1, H2 * W2

    x = jnp.transpose(x_nchw, (0, 2, 3, 1)).astype(jnp.float32)  # NHWC

    # conv1 im2col in the wrapper (Cin = 3, so the expansion is cheap).
    # Channel order (kh, kw, cin) matches w1(HWIO).reshape(KH*KW*Cin, C1).
    patches = jnp.concatenate(
        [x[:, kh:kh + H1, kw:kw + W1, :]
         for kh in range(k1) for kw in range(k1)],
        axis=-1).reshape(N, P1, k1 * k1 * C).astype(jnp.bfloat16)

    # Fold the (inference-mode) BN scale into the conv weights; cast to bf16.
    w1f = (w1 * s1.reshape(1, 1, 1, c1)).reshape(k1 * k1 * C, c1).astype(jnp.bfloat16)
    # conv2 width taps fused: (KH, KW, C1, C2) -> (KH, KW*C1, C2); channel
    # order (kw, cin) matches the in-kernel concatenation over kw.
    w2f = (w2 * s2.reshape(1, 1, 1, c2)).reshape(k2, k2 * c1, c2).astype(jnp.bfloat16)
    b1f = b1.reshape(1, c1).astype(jnp.float32)
    b2f = b2.reshape(1, c2).astype(jnp.float32)

    # Explicit scoped-VMEM sizing (inputs/outputs are double-buffered).
    per_step = (
        2 * P1 * k1 * k1 * C * 2          # patches block (bf16), double-buffered
        + 2 * P2 * c2 * 4                 # output block (f32), double-buffered
        + 2 * (w1f.size + w2f.size) * 2   # weights (bf16)
        + 2 * (c1 + c2) * 4               # biases
        + P1 * c1 * (4 + 2)               # h1 (f32 + bf16 copy)
        + P2 * k2 * c1 * 2                # fused width-im2col (bf16)
        + P2 * c2 * 4                     # f32 accumulator
    )
    vmem_limit = int(min(100 * 2**20, max(32 * 2**20, 2 * per_step)))

    kernel = functools.partial(appreciator_kernel, H1=H1, W1=W1, H2=H2, W2=W2)

    out_flat = pl.pallas_call(
        kernel,
        out_shape=jax.ShapeDtypeStruct((N, P2, c2), jnp.float32),
        grid_spec=pltpu.PrefetchScalarGridSpec(
            num_scalar_prefetch=0,
            grid=(N,),  # one batch element per grid step
            in_specs=[
                pl.BlockSpec((1, P1, k1 * k1 * C), lambda n: (n, 0, 0)),
                pl.BlockSpec(w1f.shape, lambda n: (0, 0)),
                pl.BlockSpec(b1f.shape, lambda n: (0, 0)),
                pl.BlockSpec(w2f.shape, lambda n: (0, 0, 0)),
                pl.BlockSpec(b2f.shape, lambda n: (0, 0)),
            ],
            out_specs=pl.BlockSpec((1, P2, c2), lambda n: (n, 0, 0)),
        ),
        compiler_params=pltpu.CompilerParams(
            dimension_semantics=("parallel",),
            vmem_limit_bytes=vmem_limit),
    )(patches, w1f, b1f, w2f, b2f)

    out = out_flat.reshape(N, H2, W2, c2)
    return jnp.transpose(out, (0, 3, 1, 2))  # back to NCHW


def init_params(key, c=3, c1=64, c2=128, k1=7, k2=4, eps=1e-5):
    """Deterministic synthetic parameters (PyTorch shapes, folded BN)."""
    ks = jax.random.split(key, 12)

    def make_layer(k_w, k_b, k_g, k_be, k_m, k_v, cin, cout, ksz):
        # PyTorch conv weight is OIHW; convert to HWIO for the kernel.
        w_oihw = 0.05 * jax.random.normal(k_w, (cout, cin, ksz, ksz), jnp.float32)
        w_hwio = jnp.transpose(w_oihw, (2, 3, 1, 0))
        b_conv = 0.05 * jax.random.normal(k_b, (cout,), jnp.float32)
        gamma = 1.0 + 0.1 * jax.random.normal(k_g, (cout,), jnp.float32)
        beta = 0.1 * jax.random.normal(k_be, (cout,), jnp.float32)
        mean = 0.1 * jax.random.normal(k_m, (cout,), jnp.float32)
        var = 1.0 + 0.1 * jax.random.uniform(k_v, (cout,), jnp.float32)
        scale = gamma / jnp.sqrt(var + eps)          # folded into weights later
        bias = beta - mean * scale + b_conv * scale  # stays as kernel bias
        return w_hwio, scale.reshape(1, cout), bias.reshape(1, cout)

    w1, s1, b1 = make_layer(*ks[0:6], c, c1, k1)
    w2, s2, b2 = make_layer(*ks[6:12], c1, c2, k2)
    return (w1, s1, b1, w2, s2, b2)


if __name__ == "__main__":
    key = jax.random.PRNGKey(0)
    k_x, k_p = jax.random.split(key)

    N, C, H, W = 2, 3, 16, 16
    x = jax.random.normal(k_x, (N, C, H, W), jnp.float32)
    params = init_params(k_p)

    out = jax.jit(appreciator_net)(x, params)
    out = jax.block_until_ready(out)
    assert out.shape == (N, 128, H - 9, W - 9), out.shape
    assert bool(jnp.all(jnp.isfinite(out)))
    print("KERNEL_OK")
</pallas_src>

<mosaic_0001>
module attributes {stable_mosaic.version = 11 : i64} {
  func.func @appreciator_kernel(%arg0: i32, %arg1: memref<1x100x147xbf16, #tpu.memory_space<vmem>>, %arg2: memref<147x64xbf16, #tpu.memory_space<vmem>>, %arg3: memref<1x64xf32, #tpu.memory_space<vmem>>, %arg4: memref<4x256x128xbf16, #tpu.memory_space<vmem>>, %arg5: memref<1x128xf32, #tpu.memory_space<vmem>>, %arg6: memref<1x49x128xf32, #tpu.memory_space<vmem>>) attributes {dimension_semantics = [#tpu.dimension_semantics<parallel>], iteration_bounds = array<i64: 2>, scalar_prefetch = 0 : i64, scratch_operands = 0 : i64, tpu.core_type = #tpu.core_type<tc>, window_params = [{transform_indices = @transform_0, window_bounds = array<i64: 1, 100, 147>}, {pipeline_mode = #tpu.pipeline_mode<synchronous>, transform_indices = @transform_1, window_bounds = array<i64: 147, 64>}, {pipeline_mode = #tpu.pipeline_mode<synchronous>, transform_indices = @transform_2, window_bounds = array<i64: 1, 64>}, {pipeline_mode = #tpu.pipeline_mode<synchronous>, transform_indices = @transform_3, window_bounds = array<i64: 4, 256, 128>}, {pipeline_mode = #tpu.pipeline_mode<synchronous>, transform_indices = @transform_4, window_bounds = array<i64: 1, 128>}, {transform_indices = @transform_5, window_bounds = array<i64: 1, 49, 128>}]} {
    %c0 = arith.constant 0 : index
    %c0_0 = arith.constant 0 : index
    %c0_1 = arith.constant 0 : index
    %0 = vector.load %arg1[%c0, %c0_0, %c0_1] : memref<1x100x147xbf16, #tpu.memory_space<vmem>>, vector<1x100x147xbf16>
    %1 = vector.shape_cast %0 : vector<1x100x147xbf16> to vector<100x147xbf16>
    %c0_2 = arith.constant 0 : index
    %c0_3 = arith.constant 0 : index
    %2 = vector.load %arg2[%c0_2, %c0_3] : memref<147x64xbf16, #tpu.memory_space<vmem>>, vector<147x64xbf16>
    %cst = arith.constant dense<0.000000e+00> : vector<100x64xf32>
    %3 = tpu.matmul %1, %2, %cst {dimension_numbers = #tpu.dot_dimension_numbers<[1], [0], [0], [1], [0, 0, 1, 1], [], []>} : vector<100x147xbf16>, vector<147x64xbf16>, vector<100x64xf32> -> vector<100x64xf32>
    %c0_4 = arith.constant 0 : index
    %c0_5 = arith.constant 0 : index
    %4 = vector.load %arg3[%c0_4, %c0_5] : memref<1x64xf32, #tpu.memory_space<vmem>>, vector<1x64xf32>
    %5 = vector.shape_cast %4 : vector<1x64xf32> to vector<64xf32>
    %6 = vector.shape_cast %5 : vector<64xf32> to vector<1x64xf32>
    %7 = vector.broadcast %6 : vector<1x64xf32> to vector<100x64xf32>
    %8 = arith.addf %3, %7 : vector<100x64xf32>
    %cst_6 = arith.constant 0.000000e+00 : f32
    %9 = vector.broadcast %cst_6 : f32 to vector<100x64xf32>
    %10 = arith.maximumf %8, %9 : vector<100x64xf32>
    %11 = arith.truncf %10 : vector<100x64xf32> to vector<100x64xbf16>
    %12 = vector.shape_cast %11 : vector<100x64xbf16> to vector<10x10x64xbf16>
    %cst_7 = arith.constant 0.000000e+00 : f32
    %13 = vector.broadcast %cst_7 : f32 to vector<49x128xf32>
    %14 = vector.extract_strided_slice %12 {offsets = [0, 0, 0], sizes = [7, 10, 64], strides = [1, 1, 1]} : vector<10x10x64xbf16> to vector<7x10x64xbf16>
    %15 = vector.extract_strided_slice %14 {offsets = [0, 0, 0], sizes = [7, 7, 64], strides = [1, 1, 1]} : vector<7x10x64xbf16> to vector<7x7x64xbf16>
    %16 = vector.extract_strided_slice %14 {offsets = [0, 1, 0], sizes = [7, 7, 64], strides = [1, 1, 1]} : vector<7x10x64xbf16> to vector<7x7x64xbf16>
    %17 = vector.extract_strided_slice %14 {offsets = [0, 2, 0], sizes = [7, 7, 64], strides = [1, 1, 1]} : vector<7x10x64xbf16> to vector<7x7x64xbf16>
    %18 = vector.extract_strided_slice %14 {offsets = [0, 3, 0], sizes = [7, 7, 64], strides = [1, 1, 1]} : vector<7x10x64xbf16> to vector<7x7x64xbf16>
    %19 = tpu.concatenate %15, %16, %17, %18 in 2 : vector<7x7x64xbf16>, vector<7x7x64xbf16>, vector<7x7x64xbf16>, vector<7x7x64xbf16> -> vector<7x7x256xbf16>
    %20 = vector.shape_cast %19 : vector<7x7x256xbf16> to vector<49x256xbf16>
    %c0_8 = arith.constant 0 : index
    %c0_9 = arith.constant 0 : index
    %c0_10 = arith.constant 0 : index
    %21 = vector.load %arg4[%c0_8, %c0_9, %c0_10] : memref<4x256x128xbf16, #tpu.memory_space<vmem>>, vector<1x256x128xbf16>
    %22 = vector.shape_cast %21 : vector<1x256x128xbf16> to vector<256x128xbf16>
    %cst_11 = arith.constant dense<0.000000e+00> : vector<49x128xf32>
    %23 = tpu.matmul %20, %22, %cst_11 {dimension_numbers = #tpu.dot_dimension_numbers<[1], [0], [0], [1], [0, 0, 1, 1], [], []>} : vector<49x256xbf16>, vector<256x128xbf16>, vector<49x128xf32> -> vector<49x128xf32>
    %24 = arith.addf %13, %23 : vector<49x128xf32>
    %25 = vector.extract_strided_slice %12 {offsets = [1, 0, 0], sizes = [7, 10, 64], strides = [1, 1, 1]} : vector<10x10x64xbf16> to vector<7x10x64xbf16>
    %26 = vector.extract_strided_slice %25 {offsets = [0, 0, 0], sizes = [7, 7, 64], strides = [1, 1, 1]} : vector<7x10x64xbf16> to vector<7x7x64xbf16>
    %27 = vector.extract_strided_slice %25 {offsets = [0, 1, 0], sizes = [7, 7, 64], strides = [1, 1, 1]} : vector<7x10x64xbf16> to vector<7x7x64xbf16>
    %28 = vector.extract_strided_slice %25 {offsets = [0, 2, 0], sizes = [7, 7, 64], strides = [1, 1, 1]} : vector<7x10x64xbf16> to vector<7x7x64xbf16>
    %29 = vector.extract_strided_slice %25 {offsets = [0, 3, 0], sizes = [7, 7, 64], strides = [1, 1, 1]} : vector<7x10x64xbf16> to vector<7x7x64xbf16>
    %30 = tpu.concatenate %26, %27, %28, %29 in 2 : vector<7x7x64xbf16>, vector<7x7x64xbf16>, vector<7x7x64xbf16>, vector<7x7x64xbf16> -> vector<7x7x256xbf16>
    %31 = vector.shape_cast %30 : vector<7x7x256xbf16> to vector<49x256xbf16>
    %c1 = arith.constant 1 : index
    %c0_12 = arith.constant 0 : index
    %c0_13 = arith.constant 0 : index
    %32 = vector.load %arg4[%c1, %c0_12, %c0_13] : memref<4x256x128xbf16, #tpu.memory_space<vmem>>, vector<1x256x128xbf16>
    %33 = vector.shape_cast %32 : vector<1x256x128xbf16> to vector<256x128xbf16>
    %cst_14 = arith.constant dense<0.000000e+00> : vector<49x128xf32>
    %34 = tpu.matmul %31, %33, %cst_14 {dimension_numbers = #tpu.dot_dimension_numbers<[1], [0], [0], [1], [0, 0, 1, 1], [], []>} : vector<49x256xbf16>, vector<256x128xbf16>, vector<49x128xf32> -> vector<49x128xf32>
    %35 = arith.addf %24, %34 : vector<49x128xf32>
    %36 = vector.extract_strided_slice %12 {offsets = [2, 0, 0], sizes = [7, 10, 64], strides = [1, 1, 1]} : vector<10x10x64xbf16> to vector<7x10x64xbf16>
    %37 = vector.extract_strided_slice %36 {offsets = [0, 0, 0], sizes = [7, 7, 64], strides = [1, 1, 1]} : vector<7x10x64xbf16> to vector<7x7x64xbf16>
    %38 = vector.extract_strided_slice %36 {offsets = [0, 1, 0], sizes = [7, 7, 64], strides = [1, 1, 1]} : vector<7x10x64xbf16> to vector<7x7x64xbf16>
    %39 = vector.extract_strided_slice %36 {offsets = [0, 2, 0], sizes = [7, 7, 64], strides = [1, 1, 1]} : vector<7x10x64xbf16> to vector<7x7x64xbf16>
    %40 = vector.extract_strided_slice %36 {offsets = [0, 3, 0], sizes = [7, 7, 64], strides = [1, 1, 1]} : vector<7x10x64xbf16> to vector<7x7x64xbf16>
    %41 = tpu.concatenate %37, %38, %39, %40 in 2 : vector<7x7x64xbf16>, vector<7x7x64xbf16>, vector<7x7x64xbf16>, vector<7x7x64xbf16> -> vector<7x7x256xbf16>
    %42 = vector.shape_cast %41 : vector<7x7x256xbf16> to vector<49x256xbf16>
    %c2 = arith.constant 2 : index
    %c0_15 = arith.constant 0 : index
    %c0_16 = arith.constant 0 : index
    %43 = vector.load %arg4[%c2, %c0_15, %c0_16] : memref<4x256x128xbf16, #tpu.memory_space<vmem>>, vector<1x256x128xbf16>
    %44 = vector.shape_cast %43 : vector<1x256x128xbf16> to vector<256x128xbf16>
    %cst_17 = arith.constant dense<0.000000e+00> : vector<49x128xf32>
    %45 = tpu.matmul %42, %44, %cst_17 {dimension_numbers = #tpu.dot_dimension_numbers<[1], [0], [0], [1], [0, 0, 1, 1], [], []>} : vector<49x256xbf16>, vector<256x128xbf16>, vector<49x128xf32> -> vector<49x128xf32>
    %46 = arith.addf %35, %45 : vector<49x128xf32>
    %47 = vector.extract_strided_slice %12 {offsets = [3, 0, 0], sizes = [7, 10, 64], strides = [1, 1, 1]} : vector<10x10x64xbf16> to vector<7x10x64xbf16>
    %48 = vector.extract_strided_slice %47 {offsets = [0, 0, 0], sizes = [7, 7, 64], strides = [1, 1, 1]} : vector<7x10x64xbf16> to vector<7x7x64xbf16>
    %49 = vector.extract_strided_slice %47 {offsets = [0, 1, 0], sizes = [7, 7, 64], strides = [1, 1, 1]} : vector<7x10x64xbf16> to vector<7x7x64xbf16>
    %50 = vector.extract_strided_slice %47 {offsets = [0, 2, 0], sizes = [7, 7, 64], strides = [1, 1, 1]} : vector<7x10x64xbf16> to vector<7x7x64xbf16>
    %51 = vector.extract_strided_slice %47 {offsets = [0, 3, 0], sizes = [7, 7, 64], strides = [1, 1, 1]} : vector<7x10x64xbf16> to vector<7x7x64xbf16>
    %52 = tpu.concatenate %48, %49, %50, %51 in 2 : vector<7x7x64xbf16>, vector<7x7x64xbf16>, vector<7x7x64xbf16>, vector<7x7x64xbf16> -> vector<7x7x256xbf16>
    %53 = vector.shape_cast %52 : vector<7x7x256xbf16> to vector<49x256xbf16>
    %c3 = arith.constant 3 : index
    %c0_18 = arith.constant 0 : index
    %c0_19 = arith.constant 0 : index
    %54 = vector.load %arg4[%c3, %c0_18, %c0_19] : memref<4x256x128xbf16, #tpu.memory_space<vmem>>, vector<1x256x128xbf16>
    %55 = vector.shape_cast %54 : vector<1x256x128xbf16> to vector<256x128xbf16>
    %cst_20 = arith.constant dense<0.000000e+00> : vector<49x128xf32>
    %56 = tpu.matmul %53, %55, %cst_20 {dimension_numbers = #tpu.dot_dimension_numbers<[1], [0], [0], [1], [0, 0, 1, 1], [], []>} : vector<49x256xbf16>, vector<256x128xbf16>, vector<49x128xf32> -> vector<49x128xf32>
    %57 = arith.addf %46, %56 : vector<49x128xf32>
    %c0_21 = arith.constant 0 : index
    %c0_22 = arith.constant 0 : index
    %58 = vector.load %arg5[%c0_21, %c0_22] : memref<1x128xf32, #tpu.memory_space<vmem>>, vector<1x128xf32>
    %59 = vector.shape_cast %58 : vector<1x128xf32> to vector<128xf32>
    %60 = vector.shape_cast %59 : vector<128xf32> to vector<1x128xf32>
    %61 = vector.broadcast %60 : vector<1x128xf32> to vector<49x128xf32>
    %62 = arith.addf %57, %61 : vector<49x128xf32>
    %cst_23 = arith.constant 0.000000e+00 : f32
    %63 = vector.broadcast %cst_23 : f32 to vector<49x128xf32>
    %64 = arith.maximumf %62, %63 : vector<49x128xf32>
    %c0_24 = arith.constant 0 : index
    %c0_25 = arith.constant 0 : index
    %c0_26 = arith.constant 0 : index
    %65 = vector.load %arg6[%c0_24, %c0_25, %c0_26] : memref<1x49x128xf32, #tpu.memory_space<vmem>>, vector<1x49x128xf32>
    %66 = vector.shape_cast %65 : vector<1x49x128xf32> to vector<49x128xf32>
    %67 = vector.shape_cast %64 : vector<49x128xf32> to vector<1x49x128xf32>
    tpu.vector_store %arg6[%c0_24, %c0_25, %c0_26], %67 {strides = array<i32>} : memref<1x49x128xf32, #tpu.memory_space<vmem>>, vector<1x49x128xf32>,
    return
  }
  func.func @transform_0(%arg0: i32) -> (i32, i32, i32) {
    %c0_i32 = arith.constant 0 : i32
    %c0_i32_0 = arith.constant 0 : i32
    %c0_i32_1 = arith.constant 0 : i32
    return %arg0, %c0_i32, %c0_i32_0 : i32, i32, i32
  }
  func.func @transform_1(%arg0: i32) -> (i32, i32) {
    %c0_i32 = arith.constant 0 : i32
    %c0_i32_0 = arith.constant 0 : i32
    %c0_i32_1 = arith.constant 0 : i32
    return %c0_i32, %c0_i32_0 : i32, i32
  }
  func.func @transform_2(%arg0: i32) -> (i32, i32) {
    %c0_i32 = arith.constant 0 : i32
    %c0_i32_0 = arith.constant 0 : i32
    %c0_i32_1 = arith.constant 0 : i32
    return %c0_i32, %c0_i32_0 : i32, i32
  }
  func.func @transform_3(%arg0: i32) -> (i32, i32, i32) {
    %c0_i32 = arith.constant 0 : i32
    %c0_i32_0 = arith.constant 0 : i32
    %c0_i32_1 = arith.constant 0 : i32
    %c0_i32_2 = arith.constant 0 : i32
    return %c0_i32, %c0_i32_0, %c0_i32_1 : i32, i32, i32
  }
  func.func @transform_4(%arg0: i32) -> (i32, i32) {
    %c0_i32 = arith.constant 0 : i32
    %c0_i32_0 = arith.constant 0 : i32
    %c0_i32_1 = arith.constant 0 : i32
    return %c0_i32, %c0_i32_0 : i32, i32
  }
  func.func @transform_5(%arg0: i32) -> (i32, i32, i32) {
    %c0_i32 = arith.constant 0 : i32
    %c0_i32_0 = arith.constant 0 : i32
    %c0_i32_1 = arith.constant 0 : i32
    return %arg0, %c0_i32, %c0_i32_0 : i32, i32, i32
  }
}

</mosaic_0001>

<bundles_post_ra>
// kernel: appreciator_net.1
= control target key start
LH: loop header
LB: loop body
LE: loop exit
PB: predicated region body
PF: predicated region fallthrough
CT: control target
= control target key end

     0   :  { %s4289_s18 = smov 0   ;;  %s5420_s0 = inlined_call_operand.vmem [shape: bf16[2,100,147], index: 0, kind: input, shape index: {}]   ;;  %s5421_s1 = inlined_call_operand.vmem [shape: bf16[147,64], index: 1, kind: input, shape index: {}]   ;;  %s5422_s2 = inlined_call_operand.vmem [shape: f32[1,64], index: 2, kind: input, shape index: {}]   ;;  %s5423_s3 = inlined_call_operand.vmem [shape: bf16[4,256,128], index: 3, kind: input, shape index: {}]   ;;  %s5424_s4 = inlined_call_operand.vmem [shape: f32[1,128], index: 4, kind: input, shape index: {}]   ;;  %s5425_s5 = inlined_call_operand.vmem [shape: f32[2,49,128], index: 5, kind: output, shape index: {}]  }
   0x1 LB: > { %s3729_s19 = sadd.s32 4294967295, %s4253_s18   ;;  %p3733_p0 = scmp.ge.s32.totalorder %s4253_s18, 1  ;;  %s4253_s18 = sphi %s4289_s18, %s15_s18  }
   0x2   : > { %p187_p1 = scmp.lt.s32.totalorder %s4253_s18, 3 }
   0x4   : > { %p188_p2 = pnand %p3733_p0, %p187_p1 }
   0x6   : > { %191 = sbr.rel (%p188_p2) target bundleno = 796 (0x31c), region = 40 }
   0xd   : > { %v4153_v0 = vld [vmem:[%s5421_s1] sm:$0xff]   ;;  %v4255_v1 = vmov 0   ;;  %v4154_v2 = vld [vmem:[%s5421_s1 + $0x8] sm:$0xff]   ;;  %v4155_v3 = vld [vmem:[%s5421_s1 + $0x10] sm:$0xff]   ;;  %p215_p3 = scmp.lt.s32.totalorder %s3729_s19, 1  ;;  %vm382_vm0 = vcmask 154624   ;;  %v530_v34 = vlaneseq }
   0xe   : > { %411 = vmatprep.subr.bf16.mxu0 %v4255_v1  ;;  %v4156_v4 = vld [vmem:[%s5421_s1 + $0x18] sm:$0xff]   ;;  %v4157_v5 = vld [vmem:[%s5421_s1 + $0x20] sm:$0xff]   ;;  %vm404_vm1 = vcmask 1040384   ;;  %v4158_v7 = vld [vmem:[%s5421_s1 + $0x28] sm:$0xff]   ;;  %vm405_vm2 = vcmask 1041408   ;;  %v4256_v8 = vmov 65535  }
   0xf   : > { %412 = vmatpush1.bf16.msra.mxu0 %v4153_v0  ;;  %s5455_s19 = smov (!%p215_p3, %s3729_s19), 1  ;;  %v406_v9 = vsel %vm404_vm1, 4294967295, %v4256_v8  ;;  %v4159_v10 = vld [vmem:[%s5421_s1 + $0x30] sm:$0xff]   ;;  %v4160_v12 = vld [vmem:[%s5421_s1 + $0x38] sm:$0xff]   ;;  %v4161_v13 = vld [vmem:[%s5421_s1 + $0x40] sm:$0xff]   ;;  %v531_v40 = vshrl.u32 %v530_v34, 7 }
  0x10   : > { %413 = vmatprep.subr.bf16.mxu0 %v4255_v1  ;;  %s4139_s28 = smul.u32 104, %s5455_s19  ;;  %v407_v11 = vsel %vm405_vm2, %v406_v9, 0  ;;  %v4162_v14 = vld [vmem:[%s5421_s1 + $0x48] ss:$0 sps:$4 sm:$0x33]   ;;  %v4183_v30 = vld [vmem:[%s5423_s3 + $0xc0] sm:$0xff]  }
  0x11   : > { %v409_v15 = vand.u32 %v4162_v14, %v407_v11  ;;  %v4184_v31 = vld [vmem:[%s5423_s3 + $0x80] sm:$0xff]   ;;  %3979 = vmatprep.subr.bf16.mxu1 %v4183_v30  ;;  %v4257_v32 = vmov 1966171168   ;;  %s4258_s27 = smov 64   ;;  %vm1304_vm3 = vcmask 523264   ;;  %s4140_s14 = smul.u32 56, %s5455_s19 }
  0x12   : > { %s4315_s6 = scalar_lea.vmem %s5420_s0, %s4139_s28  ;;  %3980 = vmatpush3.bf16.msra.mxu1 %v4184_v31  ;;  %v528_v33 = vunpack.c.l.s4 %v4257_v32  ;;  %v4364_v35 = vld [vmem:[%s5422_s2] ss:$0 sm:$0xff] }
  0x13   : > { %414 = vmatpush1.bf16.msra.mxu0 %v4154_v2  ;;  %v4165_v6 = vld [vmem:[%s4315_s6 + $0x4] ss:$8 sps:$4 sm:$0xff]   ;;  %v4163_v16 = vld [vmem:[%s4315_s6] ss:$8 sps:$4 sm:$0xff]   ;;  %v4166_v17 = vld [vmem:[%s4315_s6 + $0x14] ss:$8 sps:$4 sm:$0xff]   ;;  %s5408_s21 = scalar_lea.vmem %s5425_s5, %s4140_s14 }
  0x14   : > { %415 = vmatprep.subr.bf16.mxu0 %v4255_v1  ;;  %3761 = vmatprep.mubr.msk.bf16.mxu0 %vm382_vm0, %v4165_v6  ;;  %v4168_v18 = vld [vmem:[%s4315_s6 + $0x10] ss:$8 sps:$4 sm:$0xff]   ;;  %v4169_v19 = vld [vmem:[%s4315_s6 + $0x24] ss:$8 sps:$4 sm:$0xff]   ;;  %v4171_v20 = vld [vmem:[%s4315_s6 + $0x20] ss:$8 sps:$4 sm:$0xff]   ;;  %v529_v39 = vunpack.c.0.s8 %v528_v33 }
  0x15   : > { %v4172_v21 = vld [vmem:[%s4315_s6 + $0x34] ss:$8 sps:$4 sm:$0xff]   ;;  %v4174_v22 = vld [vmem:[%s4315_s6 + $0x30] ss:$8 sps:$4 sm:$0xff]   ;;  %v4175_v23 = vld [vmem:[%s4315_s6 + $0x44] ss:$8 sps:$4 sm:$0xff]  }
  0x16   : > { %v4177_v24 = vld [vmem:[%s4315_s6 + $0x40] ss:$8 sps:$4 sm:$0xff]   ;;  %v4178_v25 = vld [vmem:[%s4315_s6 + $0x54] ss:$8 sps:$4 sm:$0xff]   ;;  %v4180_v27 = vld [vmem:[%s4315_s6 + $0x50] ss:$8 sps:$4 sm:$0xff]   ;;  %v4368_v46 = vsub.s32 %v529_v39, %v531_v40 }
  0x17   : > { %416 = vmatpush1.bf16.msra.mxu0 %v4155_v3  ;;  %v238_v26 = vld [vmem:[%s4315_s6 + $0x60] sm:$0x33] }
  0x18   : > { %417 = vmatprep.subr.bf16.mxu0 %v4255_v1  ;;  %v3750_v28 = vcombine.high %v238_v26, %v238_v26  ;;  %v3749_v29 = vcombine.low %v238_v26, %v238_v26 }
  0x1b   : > { %418 = vmatpush1.bf16.msra.mxu0 %v4156_v4 }
  0x1c   : > { %419 = vmatprep.subr.bf16.mxu0 %v4255_v1 }
  0x1f   : > { %420 = vmatpush1.bf16.msra.mxu0 %v4157_v5 }
  0x20   : > { %421 = vmatprep.subr.bf16.mxu0 %v4255_v1 }
  0x23   : > { %422 = vmatpush1.bf16.msra.mxu0 %v4158_v7 }
  0x24   : > { %423 = vmatprep.subr.bf16.mxu0 %v4255_v1 }
  0x27   : > { %424 = vmatpush1.bf16.msra.mxu0 %v4159_v10 }
  0x28   : > { %425 = vmatprep.subr.bf16.mxu0 %v4255_v1 }
  0x2b   : > { %426 = vmatpush1.bf16.msra.mxu0 %v4160_v12 }
  0x2c   : > { %427 = vmatprep.subr.bf16.mxu0 %v4255_v1 }
  0x2f   : > { %428 = vmatpush1.bf16.msra.mxu0 %v4161_v13 }
  0x30   : > { %429 = vmatprep.subr.bf16.mxu0 %v4255_v1 }
  0x33   : > { %430 = vmatpush1.bf16.msra.mxu0 %v409_v15 }
  0x36   : > { %444 = vmatmul.mubr.bf16.vlgmr.msra.gmra.mrb[0].mxu0 %v4163_v16 }
  0x37   : > { %3762 = vmatprep.mubr.msk.bf16.mxu0 %vm382_vm0, %v4166_v17 }
  0x3e   : > { %452 = vmatmul.mubr.bf16.gmra.mrb[4].mxu0 %v4168_v18 }
  0x3f   : > { %3763 = vmatprep.mubr.msk.bf16.mxu0 %vm382_vm0, %v4169_v19 }
  0x46   : > { %460 = vmatmul.mubr.bf16.gmra.mrb[8].mxu0 %v4171_v20 }
  0x47   : > { %3764 = vmatprep.mubr.msk.bf16.mxu0 %vm382_vm0, %v4172_v21 }
  0x4e   : > { %468 = vmatmul.mubr.bf16.gmra.mrb[12].mxu0 %v4174_v22 }
  0x4f   : > { %3765 = vmatprep.mubr.msk.bf16.mxu0 %vm382_vm0, %v4175_v23 }
  0x56   : > { %476 = vmatmul.mubr.bf16.gmra.mrb[16].mxu0 %v4177_v24 }
  0x57   : > { %3766 = vmatprep.mubr.msk.bf16.mxu0 %vm382_vm0, %v4178_v25 }
  0x5e   : > { %484 = vmatmul.mubr.bf16.gmra.mrb[20].mxu0 %v4180_v27 }
  0x5f   : > { %3767 = vmatprep.mubr.msk.bf16.mxu0 %vm382_vm0, %v3750_v28 }
  0x66   : > { %492 = vmatmul.mubr.bf16.gmra.mrb[24].mxu0 %v3749_v29 }
 0x109   : > { %v445_v36 = vpop.f32.mrb[0].mxu0 }
 0x10a   : > { %v446_v37 = vadd.f32 %v4364_v35, %v445_v36  ;;  %v447_v38 = vpop.f32.mrb[1].mxu0 }
 0x10b   : > { %v448_v41 = vpop.f32.mrb[2].mxu0 }
 0x10c   : > { %v449_v42 = vadd.f32 %v4364_v35, %v448_v41  ;;  %v450_v43 = vpop.f32.mrb[3].mxu0  ;;  %v499_v44 = vmax.f32 %v446_v37, 0.0 }
 0x10e   : > { %v500_v45 = vmax.f32 %v449_v42, 0.0 }
 0x110   : > { %v512_v47 = vpack.c.bf16 %v500_v45, %v499_v44  ;;  %v3768_v48 = vpack.c.bf16 %v500_v45, %v500_v45 }
 0x111   : > { %v453_v49 = vpop.f32.mrb[4].mxu0 }
 0x112   : > { %v533_v50 = vrot.slane %v512_v47, %v4368_v46  ;;  %v540_v51 = vrot.slane %v3768_v48, %v4368_v46  ;;  %v455_v52 = vpop.f32.mrb[5].mxu0  ;;  %v454_v53 = vadd.f32 %v4364_v35, %v453_v49 }
 0x113   : > { %v456_v54 = vpop.f32.mrb[6].mxu0 }
 0x114   : > { %v541_v55 = vcombine.high %v533_v50, %v533_v50  ;;  %v542_v56 = vcombine.high %v540_v51, %v540_v51  ;;  %v549_v57 = vrot.slane %v533_v50, %v4368_v46  ;;  %v556_v58 = vrot.slane %v540_v51, %v4368_v46  ;;  %v458_v59 = vpop.f32.mrb[7].mxu0 }
 0x115   : > { %v457_v60 = vadd.f32 %v4364_v35, %v456_v54  ;;  %v501_v1 = vmax.f32 %v454_v53, 0.0 }
 0x116   : > { %v563_v61 = vrot.slane %v541_v55, %v4368_v46  ;;  %v571_v62 = vcombine.high %v549_v57, %v549_v57  ;;  %v570_v63 = vrot.slane %v542_v56, %v4368_v46  ;;  %v572_v0 = vcombine.high %v556_v58, %v556_v58 }
 0x117   : > { %v502_v2 = vmax.f32 %v457_v60, 0.0 }
 0x118   : > { %v573_v3 = vcombine.high %v563_v61, %v563_v61  ;;  %v842_v4 = vcombine.low %v549_v57, %v563_v61  ;;  %v3774_v5 = vcombine.high %v549_v57, %v563_v61  ;;  %v1073_v6 = vcombine.low %v563_v61, %v571_v62 }
 0x119   : > { %v513_v7 = vpack.c.bf16 %v502_v2, %v501_v1  ;;  %v461_v8 = vpop.f32.mrb[8].mxu0  ;;  %v3769_v12 = vpack.c.bf16 %v502_v2, %v502_v2  ;;  %v866_v14 = vcombine.low %v570_v63, %v572_v0  ;;  %v3778_v15 = vcombine.high %v556_v58, %v570_v63 }
 0x11a   : > { %v850_v9 = vrot.slane %v842_v4, %v4368_v46  ;;  %v857_v10 = vrot.slane %v3774_v5, %v4368_v46  ;;  %v1074_v11 = vcombine.low %v573_v3, %v556_v58  ;;  %v463_v13 = vpop.f32.mrb[9].mxu0  ;;  %v462_v17 = vadd.f32 %v4364_v35, %v461_v8 }
 0x11b   : > { %v582_v16 = vrot.slane %v513_v7, %v4368_v46  ;;  %v464_v18 = vpop.f32.mrb[10].mxu0  ;;  %v574_v20 = vcombine.high %v570_v63, %v570_v63  ;;  %v589_v21 = vrot.slane %v3769_v12, %v4368_v46  ;;  %v1081_v27 = vrot.slane %v1073_v6, %v4368_v46 }
 0x11c   : > { %v1088_v19 = vrot.slane %v1074_v11, %v4368_v46  ;;  %v465_v22 = vadd.f32 %v4364_v35, %v464_v18  ;;  %v466_v23 = vpop.f32.mrb[11].mxu0  ;;  %v858_v26 = vcombine.low %v850_v9, %v857_v10  ;;  %v503_v30 = vmax.f32 %v462_v17, 0.0 }
 0x11d   : > { %v590_v24 = vcombine.high %v582_v16, %v582_v16  ;;  %v598_v25 = vrot.slane %v582_v16, %v4368_v46  ;;  %v591_v28 = vcombine.high %v589_v21, %v589_v21  ;;  %v605_v29 = vrot.slane %v589_v21, %v4368_v46 }
 0x11e   : > { %v504_v31 = vmax.f32 %v465_v22, 0.0  ;;  %v874_v34 = vrot.slane %v866_v14, %v4368_v46  ;;  %v4390_v36 = vcombine.low %v1081_v27, %v1088_v19  ;;  %v1105_v40 = vrot.slane %v3778_v15, %v4368_v46 }
 0x11f   : > { %v612_v32 = vrot.slane %v590_v24, %v4368_v46  ;;  %v867_v33 = vcombine.low %v574_v20, %v598_v25  ;;  %v619_v37 = vrot.slane %v591_v28, %v4368_v46  ;;  %v621_v41 = vcombine.high %v605_v29, %v605_v29 }
 0x120   : > { %v514_v38 = vpack.c.bf16 %v504_v31, %v503_v30  ;;  %v3770_v39 = vpack.c.bf16 %v504_v31, %v504_v31  ;;  %v4395_v45 = vrot.slane %v858_v26, %v4368_v46 }
 0x121   : > { %v622_v42 = vcombine.high %v612_v32, %v612_v32  ;;  %v3775_v43 = vcombine.high %v598_v25, %v612_v32  ;;  %v469_v44 = vpop.f32.mrb[12].mxu0  ;;  %v891_v47 = vcombine.low %v605_v29, %v619_v37  ;;  %v1098_v48 = vcombine.low %v598_v25, %v612_v32 }
 0x122   : > { %v631_v49 = vrot.slane %v514_v38, %v4368_v46  ;;  %v471_v50 = vpop.f32.mrb[13].mxu0  ;;  %v881_v51 = vrot.slane %v867_v33, %v4368_v46  ;;  %v623_v52 = vcombine.high %v619_v37, %v619_v37  ;;  %v638_v54 = vrot.slane %v3770_v39, %v4368_v46 }
 0x123   : > { %v4399_v53 = vcombine.low %v622_v42, %v605_v29  ;;  %v470_v55 = vadd.f32 %v4364_v35, %v469_v44  ;;  %v472_v56 = vpop.f32.mrb[14].mxu0  ;;  %v4404_v57 = vrot.slane %v3775_v43, %v4368_v46  ;;  %v4411_v62 = vrot.slane %v891_v47, %v4368_v46 }
 0x124   : > { %v639_v58 = vcombine.high %v631_v49, %v631_v49  ;;  %v4407_v59 = vrot.slane %v631_v49, %v4368_v46  ;;  %v473_v60 = vadd.f32 %v4364_v35, %v472_v56  ;;  %v474_v61 = vpop.f32.mrb[15].mxu0  ;;  %v640_v63 = vcombine.high %v638_v54, %v638_v54 }
 0x125   : > { %v654_v0 = vrot.slane %v638_v54, %v4368_v46  ;;  %v505_v1 = vmax.f32 %v470_v55, 0.0  ;;  %v882_v8 = vcombine.low %v874_v34, %v881_v51  ;;  %v1112_v9 = vrot.slane %v1098_v48, %v4368_v46 }
 0x126   : > { %v4415_v2 = vrot.slane %v639_v58, %v4368_v46  ;;  %v669_v3 = vcombine.high %v4407_v59, %v4407_v59  ;;  %v4420_v4 = vcombine.low %v623_v52, %v4407_v59  ;;  %v506_v5 = vmax.f32 %v473_v60, 0.0 }
 0x127   : > { %v668_v6 = vrot.slane %v640_v63, %v4368_v46  ;;  %v670_v7 = vcombine.high %v654_v0, %v654_v0  ;;  %v4424_v10 = vcombine.low %v619_v37, %v621_v41  ;;  %v1129_v11 = vrot.slane %v4399_v53, %v4368_v46 }
 0x128   : > { %v4429_v12 = vcombine.low %v4415_v2, %v669_v3  ;;  %v515_v13 = vpack.c.bf16 %v506_v5, %v505_v1  ;;  %v1145_v16 = vcombine.low %v4407_v59, %v4415_v2  ;;  %v3779_v17 = vcombine.high %v4407_v59, %v4415_v2  ;;  %v4190_v59 = vld [vmem:[%s5423_s3 + $0x148] sm:$0xff]   ;;  %v4191_v2 = vld [vmem:[%s5423_s3 + $0x90] sm:$0xff]  }
 0x129   : > { %v938_v14 = vcombine.low %v654_v0, %v668_v6  ;;  %v3776_v15 = vcombine.high %v654_v0, %v668_v6  ;;  %v477_v18 = vpop.f32.mrb[16].mxu0  ;;  %v3771_v19 = vpack.c.bf16 %v506_v5, %v506_v5  ;;  %v4438_v23 = vrot.slane %v882_v8, %v4368_v46 }
 0x12a   : > { %v680_v20 = vrot.slane %v515_v13, %v4368_v46  ;;  %v478_v21 = vadd.f32 %v4364_v35, %v477_v18  ;;  %v479_v22 = vpop.f32.mrb[17].mxu0  ;;  %v4440_v24 = vcombine.low %v668_v6, %v670_v7  ;;  %v672_v25 = vcombine.high %v668_v6, %v668_v6 }
 0x12b   : > { %v480_v26 = vpop.f32.mrb[18].mxu0  ;;  %v1113_v27 = vcombine.low %v1105_v40, %v1112_v9  ;;  %v906_v28 = vcombine.low %v4404_v57, %v4411_v62  ;;  %v4445_v29 = vrot.slane %v938_v14, %v4368_v46  ;;  %v687_v30 = vrot.slane %v3771_v19, %v4368_v46  ;;  %v4185_v19 = vld [vmem:[%s5423_s3 + $0xc8] sm:$0xff]  }
 0x12c   : > { %v688_v31 = vcombine.high %v680_v20, %v680_v20  ;;  %v696_v32 = vrot.slane %v680_v20, %v4368_v46  ;;  %v482_v33 = vpop.f32.mrb[19].mxu0  ;;  %v4450_v34 = vrot.slane %v3776_v15, %v4368_v46  ;;  %v481_v37 = vadd.f32 %v4364_v35, %v480_v26  ;;  %v4186_v20 = vld [vmem:[%s5423_s3 + $0x140] sm:$0xff]   ;;  %3981 = vmatprep.subr.bf16.mxu1 %v4185_v19 }
 0x12d   : > { %v1020_v38 = vshll.u32 %v4438_v23, 16  ;;  %v4455_v39 = vrot.slane %v1113_v27, %v4368_v46  ;;  %v689_v40 = vcombine.high %v687_v30, %v687_v30  ;;  %v507_v43 = vmax.f32 %v478_v21, 0.0  ;;  %v4187_v21 = vld [vmem:[%s5423_s3 + $0x88] sm:$0xff]   ;;  %4059 = vmatprep.subr.bf16.mxu0 %v4186_v20 }
 0x12e   : > { %v710_v41 = vrot.slane %v688_v31, %v4368_v46  ;;  %v718_v42 = vcombine.high %v696_v32, %v696_v32  ;;  %v4458_v44 = vcombine.low %v672_v25, %v696_v32  ;;  %v508_v47 = vmax.f32 %v481_v37, 0.0  ;;  %3982 = vmatpush3.bf16.msra.mxu1 %v4187_v21 }
 0x12f   : > { %v1018_v48 = vshrl.u32 %v4438_v23, 16  ;;  %v1022_v49 = vrot.slane %v1020_v38, 1  ;;  %v703_v50 = vrot.slane %v687_v30, %v4368_v46  ;;  %v717_v51 = vrot.slane %v689_v40, %v4368_v46 }
 0x130   : > { %v720_v52 = vcombine.high %v710_v41, %v710_v41  ;;  %v3780_v54 = vcombine.high %v696_v32, %v710_v41  ;;  %v516_v55 = vpack.c.bf16 %v508_v47, %v507_v43  ;;  %v3772_v56 = vpack.c.bf16 %v508_v47, %v508_v47 }
 0x131   : > { %v1023_v57 = vor.u32 %v1022_v49, %v1018_v48  ;;  %v1249_v58 = vshrl.u32 %v4455_v39, 16  ;;  %v485_v60 = vpop.f32.mrb[20].mxu0  ;;  %v4464_v61 = vcombine.low %v710_v41, %v718_v42  ;;  %v3777_v63 = vcombine.high %v703_v50, %v717_v51 }
 0x132   : > { %v4466_v62 = vcombine.low %v720_v52, %v703_v50  ;;  %v1184_v0 = vrot.slane %v4458_v44, %v4368_v46  ;;  %v487_v1 = vpop.f32.mrb[21].mxu0  ;;  %v1194_v3 = vcombine.low %v703_v50, %v717_v51  ;;  %v729_v5 = vrot.slane %v516_v55, %v4368_v46 }
 0x133   : > { %v736_v6 = vrot.slane %v3772_v56, %v4368_v46  ;;  %1061 = vrot.lane.b32.xlu0 %v1023_v57, %s4258_s27  ;;  %v1251_v7 = vshll.u32 %v4455_v39, 16  ;;  %v488_v8 = vpop.f32.mrb[22].mxu0  ;;  %v4477_v13 = vrot.slane %v3780_v54, %v4368_v46  ;;  %v721_v14 = vcombine.high %v717_v51, %v717_v51 }
 0x134   : > { %v977_v9 = vrot.slane %v4466_v62, %v4368_v46  ;;  %v4480_v15 = vrot.slane %v906_v28, %v4368_v46  ;;  %v490_v18 = vpop.f32.mrb[23].mxu0  ;;  %v737_v22 = vcombine.high %v729_v5, %v729_v5  ;;  %v4492_v26 = vrot.slane %v729_v5, %v4368_v46  ;;  %v4188_v28 = vld [vmem:[%s5423_s3 + $0x100] sm:$0xff]  }
 0x135   : > { %v738_v25 = vcombine.high %v736_v6, %v736_v6  ;;  %v4495_v27 = vrot.slane %v736_v6, %v4368_v46  ;;  %v1253_v30 = vrot.slane %v1251_v7, 1  ;;  %v1136_v33 = vrot.slane %v4424_v10, %v4368_v46  ;;  %4060 = vmatpush3.bf16.msra.mxu0 %v4188_v28 }
 0x136   : > { %v1025_v31 = vshrl.u32 %v4480_v15, 16  ;;  %v1027_v32 = vshll.u32 %v4480_v15, 16  ;;  %v4505_v37 = vrot.slane %v737_v22, %v4368_v46  ;;  %v767_v40 = vcombine.high %v4492_v26, %v4492_v26  ;;  %4061 = vmatprep.subr.bf16.mxu0 %v4190_v59 }
 0x137   : > { %v4508_v38 = vrot.slane %v738_v25, %v4368_v46  ;;  %v768_v41 = vcombine.high %v4495_v27, %v4495_v27  ;;  %v4515_v42 = vcombine.low %v721_v14, %v4492_v26  ;;  %v1254_v43 = vor.u32 %v1253_v30, %v1249_v58 }
 0x138   : > { %v1029_v10 = vrot.slane %v1027_v32, 1  ;;  %v1137_v47 = vcombine.low %v1129_v11, %v1136_v33  ;;  %v4521_v48 = vrot.slane %v3777_v63, %v4368_v46  ;;  %v4524_v49 = vrot.slane %v1194_v3, %v4368_v46 }
 0x139   : > { %v769_v50 = vcombine.high %v4505_v37, %v4505_v37  ;;  %v987_v51 = vcombine.low %v4492_v26, %v4505_v37  ;;  %v493_v52 = vpop.f32.mrb[24].mxu0  ;;  %v4531_v54 = vcombine.low %v4505_v37, %v767_v40  ;;  %v1225_v53 = vrot.slane %v4515_v42, %v4368_v46  ;;  %1292 = vrot.lane.b32.xlu1 %v1254_v43, %s4258_s27  ;;  %v4200_v26 = vld [vmem:[%s5423_s3 + $0x118] sm:$0xff]  }
 0x13a   : > { %v4536_v11 = vcombine.low %v4508_v38, %v768_v41  ;;  %v1030_v55 = vor.u32 %v1029_v10, %v1025_v31  ;;  %v495_v56 = vpop.f32.mrb[25].mxu0  ;;  %v1636_v58 = vcombine.low %v4495_v27, %v4508_v38  ;;  %v4545_v63 = vrot.slane %v1137_v47, %v4368_v46 }
 0x13b   : > { %v4540_v57 = vcombine.low %v769_v50, %v4495_v27  ;;  %v486_v1 = vadd.f32 %v4364_v35, %v485_v60  ;;  %v496_v3 = vpop.f32.mrb[26].mxu0  ;;  %v489_v5 = vadd.f32 %v4364_v35, %v488_v8  ;;  %v1153_v6 = vrot.slane %v1145_v16, %v4368_v46  ;;  %v4189_v16 = vld [vmem:[%s5423_s3 + $0xd0] sm:$0xff]  }
 0x13c   : > { %1063 = vrot.lane.b32.xlu0 %v1030_v55, %s4258_s27  ;;  %v1160_v7 = vrot.slane %v3779_v17, %v4368_v46  ;;  %v922_v14 = vrot.slane %v4420_v4, %v4368_v46  ;;  %v497_v18 = vpop.f32.mrb[27].mxu0  ;;  %v1256_v60 = vshrl.u32 %v4545_v63, 16  ;;  %v1258_v19 = vshll.u32 %v4545_v63, 16  ;;  %3983 = vmatprep.subr.bf16.mxu1 %v4189_v16 }
 0x13d   : > { %v509_v20 = vmax.f32 %v486_v1, 0.0  ;;  %v929_v8 = vrot.slane %v4429_v12, %v4368_v46  ;;  %v510_v4 = vmax.f32 %v489_v5, 0.0  ;;  %v954_v21 = vcombine.low %v4445_v29, %v4450_v34  ;;  %v4192_v12 = vld [vmem:[%s5423_s3 + $0x108] sm:$0xff]   ;;  %3984 = vmatpush3.bf16.msra.mxu1 %v4191_v2  ;;  %v4194_v1 = vld [vmem:[%s5423_s3 + $0x150] sm:$0xff]  }
 0x13e   : > { %v1161_v17 = vcombine.low %v1153_v6, %v1160_v7  ;;  %v494_v22 = vadd.f32 %v4364_v35, %v493_v52  ;;  %v1260_v25 = vrot.slane %v1258_v19, 1  ;;  %v1177_v30 = vrot.slane %v4440_v24, %v4368_v46  ;;  %4062 = vmatpush3.bf16.msra.mxu0 %v4192_v12  ;;  %v4196_v18 = vld [vmem:[%s5423_s3 + $0x110] sm:$0xff]  }
 0x13f   : > { %v930_v28 = vcombine.low %v922_v14, %v929_v8  ;;  %v1209_v31 = vcombine.low %v4477_v13, %v4524_v49  ;;  %v517_v32 = vpack.c.bf16 %v510_v4, %v509_v20  ;;  %v3773_v33 = vpack.c.bf16 %v510_v4, %v510_v4  ;;  %v4195_v14 = vld [vmem:[%s5423_s3 + $0x98] sm:$0xff]   ;;  %4063 = vmatprep.subr.bf16.mxu0 %v4194_v1  ;;  %v4201_v13 = vld [vmem:[%s5423_s3 + $0xe8] sm:$0xff]  }
 0x140   : > { %v4584_v29 = vrot.slane %v1161_v17, %v4368_v46  ;;  %v4587_v35 = vrot.slane %v954_v21, %v4368_v46  ;;  %v1261_v34 = vor.u32 %v1260_v25, %v1256_v60  ;;  %v511_v41 = vmax.f32 %v494_v22, 0.0  ;;  %v4197_v60 = vld [vmem:[%s5423_s3 + $0xe0] sm:$0xff]   ;;  %v4198_v21 = vld [vmem:[%s5423_s3 + $0x158] sm:$0xff]   ;;  %v4203_v49 = vld [vmem:[%s5423_s3 + $0xa8] sm:$0xff]  }
 0x141   : > { %v4590_v40 = vrot.slane %v930_v28, %v4368_v46  ;;  %v1185_v24 = vcombine.low %v1177_v30, %v1184_v0  ;;  %v3781_v43 = vcombine.high %v4495_v27, %v4508_v38  ;;  %v778_v10 = vrot.slane %v517_v32, %v4368_v46  ;;  %v4193_v0 = vld [vmem:[%s5423_s3 + $0xd8] sm:$0xff]   ;;  %v4199_v30 = vld [vmem:[%s5423_s3 + $0xa0] sm:$0xff]  }
 0x142   : > { %v785_v47 = vrot.slane %v3773_v33, %v4368_v46  ;;  %v1265_v50 = vshll.u32 %v4584_v29, 16  ;;  %1294 = vrot.lane.b32.xlu1 %v1261_v34, %s4258_s27  ;;  %v1263_v52 = vshrl.u32 %v4584_v29, 16  ;;  %v1041_v44 = vshll.u32 %v4587_v35, 16  ;;  %3985 = vmatprep.subr.bf16.mxu1 %v4193_v0 }
 0x143   : > { %v1032_v55 = vshrl.u32 %v4590_v40, 16  ;;  %v1034_v56 = vshll.u32 %v4590_v40, 16  ;;  %v786_v3 = vcombine.high %v778_v10, %v778_v10  ;;  %v794_v6 = vrot.slane %v778_v10, %v4368_v46  ;;  %3986 = vmatpush3.bf16.msra.mxu1 %v4195_v14  ;;  %4064 = vmatpush3.bf16.msra.mxu0 %v4196_v18 }
 0x144   : > { %v787_v5 = vcombine.high %v785_v47, %v785_v47  ;;  %v801_v7 = vrot.slane %v785_v47, %v4368_v46  ;;  %v1267_v19 = vrot.slane %v1265_v50, 1  ;;  %v1043_v8 = vrot.slane %v1041_v44, 1  ;;  %3987 = vmatprep.subr.bf16.mxu1 %v4197_v60  ;;  %4065 = vmatprep.subr.bf16.mxu0 %v4198_v21 }
 0x145   : > { %v1036_v20 = vrot.slane %v1034_v56, 1  ;;  %v518_v16 = vpack.c.bf16 %v511_v41, %v511_v41  ;;  %v808_v59 = vrot.slane %v786_v3, %v4368_v46  ;;  %v816_v4 = vcombine.high %v794_v6, %v794_v6 }
 0x146   : > { %v815_v2 = vrot.slane %v787_v5, %v4368_v46  ;;  %v817_v17 = vcombine.high %v801_v7, %v801_v7  ;;  %v1001_v22 = vrot.slane %v987_v51, %v4368_v46  ;;  %v1268_v12 = vor.u32 %v1267_v19, %v1263_v52 }
 0x147   : > { %v1037_v25 = vor.u32 %v1036_v20, %v1032_v55  ;;  %v826_v28 = vrot.slane %v518_v16, %v4368_v46  ;;  %v818_v32 = vcombine.high %v808_v59, %v808_v59  ;;  %v2566_v33 = vcombine.low %v794_v6, %v808_v59  ;;  %3988 = vmatpush3.bf16.msra.mxu1 %v4199_v30 }
 0x148   : > { %v3870_v34 = vcombine.high %v794_v6, %v808_v59  ;;  %v1039_v41 = vshrl.u32 %v4587_v35, 16  ;;  %v3106_v37 = vcombine.low %v815_v2, %v817_v17  ;;  %v3923_v51 = vcombine.high %v801_v7, %v815_v2  ;;  %1296 = vrot.lane.b32.xlu1 %v1268_v12, %s4258_s27  ;;  %4066 = vmatpush3.bf16.msra.mxu0 %v4200_v26 }
 0x149   : > { %1065 = vrot.lane.b32.xlu0 %v1037_v25, %s4258_s27  ;;  %v819_v10 = vcombine.high %v815_v2, %v815_v2  ;;  %v4641_v47 = vcombine.low %v808_v59, %v816_v4  ;;  %v4643_v50 = vcombine.low %v818_v32, %v801_v7  ;;  %v827_v55 = vcombine.high %v826_v28, %v826_v28  ;;  %v4205_v32 = vld [vmem:[%s5423_s3 + $0xf0] sm:$0xff]  }
 0x14a   : > { %v1044_v52 = vor.u32 %v1043_v8, %v1039_v41  ;;  %v4646_v56 = vrot.slane %v2566_v33, %v4368_v46  ;;  %v4649_v44 = vrot.slane %v3870_v34, %v4368_v46  ;;  %v834_v0 = vrot.slane %v826_v28, %v4368_v46  ;;  %v4204_v8 = vld [vmem:[%s5423_s3 + $0x120] sm:$0xff]   ;;  %3989 = vmatprep.subr.bf16.mxu1 %v4201_v13  ;;  %v4206_v33 = vld [vmem:[%s5423_s3 + $0x168] sm:$0xff]   ;;  %v4207_v34 = vld [vmem:[%s5423_s3 + $0xb0] sm:$0xff]  }
 0x14b   : > { %v4653_v1 = vrot.slane %v1185_v24, %v4368_v46  ;;  %v841_v3 = vrot.slane %v827_v55, %v4368_v46  ;;  %v3114_v5 = vrot.slane %v3106_v37, %v4368_v46  ;;  %v4661_v6 = vrot.slane %v1209_v31, %v4368_v46  ;;  %3990 = vmatpush3.bf16.msra.mxu1 %v4203_v49 }
 0x14c   : > { %v970_v7 = vrot.slane %v4464_v61, %v4368_v46  ;;  %v3107_v14 = vcombine.low %v819_v10, %v834_v0  ;;  %v4667_v24 = vrot.slane %v3923_v51, %v4368_v46  ;;  %v1232_v60 = vrot.slane %v4531_v54, %v4368_v46  ;;  %v4202_v61 = vld [vmem:[%s5423_s3 + $0x160] sm:$0xff]   ;;  %v4208_v51 = vld [vmem:[%s5423_s3 + $0x128] sm:$0xff]   ;;  %3991 = vmatprep.subr.bf16.mxu1 %v4205_v32 }
 0x14d   : > { %1067 = vrot.lane.b32.xlu0 %v1044_v52, %s4258_s27  ;;  %v1272_v18 = vshll.u32 %v4653_v1, 16  ;;  %v3140_v31 = vcombine.low %v834_v0, %v841_v3  ;;  %v1270_v19 = vshrl.u32 %v4653_v1, 16  ;;  %v1279_v20 = vshll.u32 %v4661_v6, 16  ;;  %4067 = vmatprep.subr.bf16.mxu0 %v4202_v61 }
 0x14e   : > { %v978_v54 = vcombine.low %v970_v7, %v977_v9  ;;  %v3121_v16 = vrot.slane %v3107_v14, %v4368_v46  ;;  %v1233_v2 = vcombine.low %v1225_v53, %v1232_v60  ;;  %v1002_v4 = vcombine.low %v4521_v48, %v1001_v22  ;;  %4068 = vmatpush3.bf16.msra.mxu0 %v4204_v8  ;;  %v4213_v8 = vld [vmem:[%s5423_s3 + $0x178] sm:$0xff]  }
 0x14f   : > { %v1274_v59 = vrot.slane %v1272_v18, 1  ;;  %v4695_v17 = vrot.slane %v3140_v31, %v4368_v46  ;;  %v1277_v62 = vshrl.u32 %v4661_v6, 16  ;;  %v1281_v9 = vrot.slane %v1279_v20, 1  ;;  %4069 = vmatprep.subr.bf16.mxu0 %v4206_v33  ;;  %3992 = vmatpush3.bf16.msra.mxu1 %v4207_v34 }
 0x150   : > { %v4699_v21 = vrot.slane %v978_v54, %v4368_v46  ;;  %v3122_v12 = vcombine.low %v3114_v5, %v3121_v16  ;;  %v4702_v42 = vrot.slane %v1233_v2, %v4368_v46  ;;  %v4705_v48 = vrot.slane %v1002_v4, %v4368_v46  ;;  %v4214_v16 = vld [vmem:[%s5423_s3 + $0x138] sm:$0xff]  }
 0x151   : > { %v1275_v25 = vor.u32 %v1274_v59, %v1270_v19  ;;  %v3155_v53 = vcombine.low %v4667_v24, %v4695_v17  ;;  %v1282_v22 = vor.u32 %v1281_v9, %v1277_v62  ;;  %v1644_v30 = vrot.slane %v1636_v58, %v4368_v46  ;;  %v4210_v24 = vld [vmem:[%s5423_s3 + $0x170] sm:$0xff]   ;;  %v4215_v17 = vld [vmem:[%s5423_s3 + $0x40] sm:$0xff]  }
 0x152   : > { %v1048_v28 = vshll.u32 %v4699_v21, 16  ;;  %v1046_v41 = vshrl.u32 %v4699_v21, 16  ;;  %v1284_v26 = vshrl.u32 %v4702_v42, 16  ;;  %v1286_v58 = vshll.u32 %v4702_v42, 16  ;;  %4070 = vmatpush3.bf16.msra.mxu0 %v4208_v51 }
 0x153   : > { %1298 = vrot.lane.b32.xlu1 %v1275_v25, %s4258_s27  ;;  %v1055_v37 = vshll.u32 %v4705_v48, 16  ;;  %v1651_v52 = vrot.slane %v3781_v43, %v4368_v46  ;;  %v1611_v55 = vrot.slane %v4540_v57, %v4368_v46  ;;  %v1618_v0 = vrot.slane %v4536_v11, %v4368_v46  ;;  %v4209_v11 = vld [vmem:[%s5423_s3 + $0xf8] sm:$0xff]   ;;  %4071 = vmatprep.subr.bf16.mxu0 %v4210_v24 }
 0x154   : > { %v1050_v10 = vrot.slane %v1048_v28, 1  ;;  %v1288_v3 = vrot.slane %v1286_v58, 1  ;;  %v1053_v5 = vshrl.u32 %v4705_v48, 16  ;;  %v4742_v14 = vrot.slane %v4390_v36, %v4368_v46  ;;  %v4211_v36 = vld [vmem:[%s5423_s3 + $0xb8] sm:$0xff]   ;;  %3993 = vmatprep.subr.bf16.mxu1 %v4209_v11 }
 0x155   : > { %v1057_v7 = vrot.slane %v1055_v37, 1  ;;  %v1652_v38 = vcombine.low %v1644_v30, %v1651_v52  ;;  %v1619_v43 = vcombine.low %v1611_v55, %v1618_v0  ;;  %v2582_v57 = vcombine.low %v4646_v56, %v4649_v44  ;;  %v4212_v56 = vld [vmem:[%s5423_s3 + $0x130] sm:$0xff]   ;;  %3994 = vmatpush3.bf16.msra.mxu1 %v4211_v36 }
 0x156   : > { %v1051_v27 = vor.u32 %v1050_v10, %v1046_v41  ;;  %v2614_v18 = vrot.slane %v4643_v50, %v4368_v46  ;;  %v1289_v60 = vor.u32 %v1288_v3, %v1284_v26  ;;  %v2607_v50 = vrot.slane %v4641_v47, %v4368_v46  ;;  %4072 = vmatpush3.bf16.msra.mxu0 %v4212_v56 }
 0x157   : > { %1300 = vrot.lane.b32.xlu1 %v1282_v22, %s4258_s27  ;;  %v1058_v13 = vor.u32 %v1057_v7, %v1053_v5  ;;  %v4763_v44 = vrot.slane %v1652_v38, %v4368_v46  ;;  %v4766_v61 = vrot.slane %v1619_v43, %v4368_v46  ;;  %v4769_v49 = vrot.slane %v2582_v57, %v4368_v46 }
 0x158   : > { %1069 = vrot.lane.b32.xlu0 %v1051_v27, %s4258_s27  ;;  %v1013_v20 = vshll.u32 %v4395_v45, 16  ;;  %v1244_v54 = vshll.u32 %v4742_v14, 16  ;;  %v2615_v59 = vcombine.low %v2607_v50, %v2614_v18  ;;  %v4786_v2 = vrot.slane %v3122_v12, %v4368_v46  ;;  %4073 = vmatprep.subr.bf16.mxu0 %v4213_v8 }
 0x159   : > { %v1663_v31 = vshll.u32 %v4763_v44, 16  ;;  %v1630_v19 = vshll.u32 %v4766_v61, 16  ;;  %v1661_v47 = vshrl.u32 %v4763_v44, 16  ;;  %v4789_v4 = vrot.slane %v3155_v53, %v4368_v46  ;;  %4019 = vmatprep.subr.bf16.mxu1 %v4215_v17 }
 0x15a   : > { %v1628_v9 = vshrl.u32 %v4766_v61, 16  ;;  %v2593_v22 = vshll.u32 %v4769_v49, 16  ;;  %v4798_v28 = vrot.slane %v2615_v59, %v4368_v46  ;;  %v1015_v30 = vrot.slane %v1013_v20, 1  ;;  %4074 = vmatpush3.bf16.msra.mxu0 %v4214_v16 }
 0x15b   : > { %1302 = vrot.lane.b32.xlu1 %v1289_v60, %s4258_s27  ;;  %v1665_v62 = vrot.slane %v1663_v31, 1  ;;  %v1632_v25 = vrot.slane %v1630_v19, 1  ;;  %v1246_v32 = vrot.slane %v1244_v54, 1  ;;  %v1011_v33 = vshrl.u32 %v4395_v45, 16 }
 0x15c   : > { %1071 = vrot.lane.b32.xlu0 %v1058_v13, %s4258_s27  ;;  %v1242_v34 = vshrl.u32 %v4742_v14, 16  ;;  %v2591_v41 = vshrl.u32 %v4769_v49, 16  ;;  %v2626_v26 = vshll.u32 %v4798_v28, 16  ;;  %v2595_v58 = vrot.slane %v2593_v22, 1 }
 0x15d   : > { %v1666_v12 = vor.u32 %v1665_v62, %v1661_v47  ;;  %v1633_v53 = vor.u32 %v1632_v25, %v1628_v9  ;;  %v2624_v37 = vshrl.u32 %v4798_v28, 16  ;;  %v3133_v51 = vshll.u32 %v4786_v2, 16 }
 0x15e   : > { %v3166_v10 = vshll.u32 %v4789_v4, 16  ;;  %v2628_v52 = vrot.slane %v2626_v26, 1  ;;  %v1016_v55 = vor.u32 %v1015_v30, %v1011_v33  ;;  %v1247_v0 = vor.u32 %v1246_v32, %v1242_v34 }
 0x15f   : > { %1667 = vrot.lane.b32.xlu1 %v1666_v12, %s4258_s27  ;;  %v3131_v3 = vshrl.u32 %v4786_v2, 16  ;;  %v3164_v5 = vshrl.u32 %v4789_v4, 16  ;;  %v2596_v7 = vor.u32 %v2595_v58, %v2591_v41  ;;  %v3135_v38 = vrot.slane %v3133_v51, 1 }
 0x160   : > { %1634 = vrot.lane.b32.xlu0 %v1633_v53, %s4258_s27  ;;  %v2629_v27 = vor.u32 %v2628_v52, %v2624_v37  ;;  %v3168_v43 = vrot.slane %v3166_v10, 1 }
 0x161   : > { %v3136_v57 = vor.u32 %v3135_v38, %v3131_v3 }
 0x162   : > { %v3169_v11 = vor.u32 %v3168_v43, %v3164_v5 }
 0x163   : > { %1290 = vrot.lane.b32.xlu1 %v1247_v0, %s4258_s27 }
 0x164   : > { %1059 = vrot.lane.b32.xlu0 %v1016_v55, %s4258_s27 }
 0x167   : > { %2630 = vrot.lane.b32.xlu1 %v2629_v27, %s4258_s27 }
 0x168   : > { %2597 = vrot.lane.b32.xlu0 %v2596_v7, %s4258_s27 }
 0x16b   : > { %3170 = vrot.lane.b32.xlu1 %v3169_v11, %s4258_s27 }
 0x16c   : > { %3137 = vrot.lane.b32.xlu0 %v3136_v57, %s4258_s27 }
 0x1a5   : > { %v1062_v24 = vpop.permute.xlu0 %1061 }
 0x1a6   : > { %v1308_v18 = vsel %vm1304_vm3, %v4438_v23, %v1062_v24 }
 0x1ab   : > { %v1293_v36 = vpop.permute.xlu1 %1292 }
 0x1ac   : > { %v1322_v60 = vsel %vm1304_vm3, %v4455_v39, %v1293_v36 }
 0x1ad   : > { %v1372_v13 = vcombine.low %v1308_v18, %v1322_v60 }
 0x1ae   : > { %v1064_v31 = vpop.permute.xlu0 %1063 }
 0x1af   : > { %v1379_v56 = vrot.slane %v1372_v13, %v4368_v46  ;;  %v1310_v54 = vsel %vm1304_vm3, %v4480_v15, %v1064_v31 }
 0x1b1   : > { %v1380_v50 = vcombine.high %v1379_v56, %v1379_v56  ;;  %v4831_v39 = vrot.slane %v1379_v56, %v4368_v46 }
 0x1b3   : > { %v4823_v20 = vrot.slane %v1380_v50, %v4368_v46  ;;  %v4854_v30 = vcombine.high %v4831_v39, %v4831_v39  ;;  %v1530_v11 = vunpack.i.h.s16 %v4831_v39 }
 0x1b4   : > { %v1295_v19 = vpop.permute.xlu1 %1294 }
 0x1b5   : > { %v1324_v8 = vsel %vm1304_vm3, %v4545_v63, %v1295_v19  ;;  %v4835_v47 = vcombine.high %v4823_v20, %v4823_v20 }
 0x1b6   : > { %v1397_v16 = vcombine.low %v1310_v54, %v1324_v8 }
 0x1b8   : > { %v1404_v23 = vrot.slane %v1397_v16, %v4368_v46 }
 0x1ba   : > { %v1405_v59 = vcombine.high %v1404_v23, %v1404_v23  ;;  %v4838_v17 = vrot.slane %v1404_v23, %v4368_v46  ;;  %v1297_v62 = vpop.permute.xlu1 %1296 }
 0x1bb   : > { %v1066_v9 = vpop.permute.xlu0 %1065  ;;  %v1326_v15 = vsel %vm1304_vm3, %v4584_v29, %v1297_v62 }
 0x1bc   : > { %v1312_v63 = vsel %vm1304_vm3, %v4590_v40, %v1066_v9  ;;  %v4845_v25 = vrot.slane %v1405_v59, %v4368_v46  ;;  %v4849_v12 = vcombine.high %v4838_v17, %v4838_v17  ;;  %v1537_v53 = vunpack.i.h.s16 %v4838_v17 }
 0x1bd   : > { %v1422_v22 = vcombine.low %v1312_v63, %v1326_v15  ;;  %v3814_v29 = vpack.i.b16 %v4838_v17, %v4835_v47  ;;  %v1765_v40 = vcombine.low %v4831_v39, %v4823_v20 }
 0x1be   : > { %v1421_v33 = vcombine.high %v4845_v25, %v4845_v25  ;;  %v1539_v34 = vunpack.i.h.s16 %v4845_v25  ;;  %v1541_v41 = vunpack.i.h.s16 %v4849_v12  ;;  %v3815_v26 = vpack.i.b16 %v4845_v25, %v1537_v53 }
 0x1bf   : > { %v1429_v32 = vrot.slane %v1422_v22, %v4368_v46  ;;  %v1766_v58 = vcombine.low %v4854_v30, %v3814_v29  ;;  %v1775_v55 = vrot.slane %v1765_v40, %v4368_v46  ;;  %v2711_v3 = vcombine.low %v4838_v17, %v4845_v25  ;;  %v1068_v38 = vpop.permute.xlu0 %1067 }
 0x1c0   : > { %v3816_v10 = vpack.i.b16 %v4849_v12, %v1539_v34  ;;  %v3817_v52 = vpack.i.b16 %v1421_v33, %v1541_v41  ;;  %v1314_v19 = vsel %vm1304_vm3, %v4587_v35, %v1068_v38 }
 0x1c1   : > { %v1430_v37 = vcombine.high %v1429_v32, %v1429_v32  ;;  %v4868_v51 = vrot.slane %v1429_v32, %v4368_v46  ;;  %v1782_v0 = vrot.slane %v1766_v58, %v4368_v46  ;;  %v2721_v9 = vrot.slane %v2711_v3, %v4368_v46 }
 0x1c2   : > { %v1767_v43 = vcombine.low %v3815_v26, %v3816_v10 }
 0x1c3   : > { %v4878_v7 = vrot.slane %v1430_v37, %v4368_v46  ;;  %v4882_v27 = vcombine.high %v4868_v51, %v4868_v51  ;;  %v1768_v57 = vcombine.low %v3817_v52, %v4868_v51  ;;  %v1798_v24 = vcombine.high %v1775_v55, %v1782_v0 }
 0x1c4   : > { %v1544_v36 = vunpack.i.h.s16 %v4868_v51  ;;  %v4888_v18 = vpack.i.b16 %v4868_v51, %v1421_v33  ;;  %v1789_v13 = vrot.slane %v1767_v43, %v4368_v46  ;;  %v1797_v8 = vcombine.low %v1775_v55, %v1782_v0  ;;  %v4217_v43 = vld [vmem:[%s5423_s3 + $0x48] sm:$0xff]  }
 0x1c5   : > { %v1299_v60 = vpop.permute.xlu1 %1298  ;;  %v1796_v56 = vrot.slane %v1768_v57, %v4368_v46  ;;  %v4894_v50 = vcombine.high %v4878_v7, %v4878_v7  ;;  %v1546_v31 = vunpack.i.h.s16 %v4878_v7  ;;  %v1548_v16 = vunpack.i.h.s16 %v4882_v27 }
 0x1c6   : > { %v1328_v54 = vsel %vm1304_vm3, %v4653_v1, %v1299_v60  ;;  %v1814_v15 = vrot.slane %v1798_v24, %v4368_v46  ;;  %v4905_v63 = vpack.i.b16 %v4878_v7, %v1544_v36  ;;  %v2712_v35 = vcombine.low %v4849_v12, %v4888_v18 }
 0x1c7   : > { %v1447_v23 = vcombine.low %v1314_v19, %v1328_v54  ;;  %v1800_v59 = vcombine.high %v1789_v13, %v1796_v56  ;;  %v1799_v62 = vcombine.low %v1789_v13, %v1796_v56  ;;  %v4908_v22 = vpack.i.b16 %v4882_v27, %v1546_v31 }
 0x1c8   : > { %v4916_v32 = vpack.i.b16 %v4894_v50, %v1548_v16  ;;  %v1807_v41 = vrot.slane %v1797_v8, %v4368_v46  ;;  %v2728_v58 = vrot.slane %v2712_v35, %v4368_v46  ;;  %v1532_v57 = vunpack.i.h.s16 %v4823_v20 }
 0x1c9   : > { %v1454_v1 = vrot.slane %v1447_v23, %v4368_v46  ;;  %v1301_v53 = vpop.permute.xlu1 %1300  ;;  %v1828_v29 = vrot.slane %v1800_v59, %v4368_v46  ;;  %v1821_v40 = vrot.slane %v1799_v62, %v4368_v46  ;;  %v2713_v26 = vcombine.low %v4905_v63, %v4908_v22  ;;  %v4218_v59 = vld [vmem:[%s5423_s3 + $0x8] sm:$0xff]  }
 0x1ca   : > { %v1330_v33 = vsel %vm1304_vm3, %v4661_v6, %v1301_v53  ;;  %v1070_v34 = vpop.permute.xlu0 %1069  ;;  %v4216_v6 = vld [vmem:[%s5423_s3] sm:$0xff]   ;;  %v2743_v38 = vcombine.low %v2721_v9, %v2728_v58  ;;  %v2744_v54 = vcombine.high %v2721_v9, %v2728_v58  ;;  %v1831_v62 = vcombine.low %v4878_v7, %v4882_v27 }
 0x1cb   : > { %v1455_v37 = vcombine.high %v1454_v1, %v1454_v1  ;;  %v4925_v10 = vrot.slane %v1454_v1, %v4368_v46  ;;  %v1316_v52 = vsel %vm1304_vm3, %v4699_v21, %v1070_v34  ;;  %v1830_v55 = vcombine.low %v1814_v15, %v1828_v29 }
 0x1cc   : > { %v1472_v0 = vcombine.low %v1316_v52, %v1330_v33  ;;  %v1829_v3 = vcombine.low %v1807_v41, %v1821_v40  ;;  %v2735_v13 = vrot.slane %v2713_v26, %v4368_v46  ;;  %v2753_v9 = vrot.slane %v2743_v38, %v4368_v46 }
 0x1cd   : > { %v4937_v24 = vrot.slane %v1455_v37, %v4368_v46  ;;  %v4941_v21 = vcombine.high %v4925_v10, %v4925_v10  ;;  %v1303_v36 = vpop.permute.xlu1 %1302  ;;  %2121 = vmatprep.mubr.bf16.mxu1 %v1830_v55  ;;  %v2714_v60 = vcombine.low %v4916_v32, %v4925_v10  ;;  %v1551_v8 = vunpack.i.h.s16 %v4925_v10 }
 0x1ce   : > { %v1479_v56 = vrot.slane %v1472_v0, %v4368_v46  ;;  %v1332_v31 = vsel %vm1304_vm3, %v4702_v42, %v1303_v36  ;;  %v1072_v19 = vpop.permute.xlu0 %1071  ;;  %2122 = vmatmul.mubr.bf16.vlgmr.msra.gmra.mrb[0].mxu1 %v1829_v3  ;;  %v1534_v42 = vunpack.i.h.s16 %v4854_v30  ;;  %v2760_v58 = vrot.slane %v2744_v54, %v4368_v46 }
 0x1cf   : > { %v1318_v16 = vsel %vm1304_vm3, %v4705_v48, %v1072_v19  ;;  %v2742_v23 = vrot.slane %v2714_v60, %v4368_v46  ;;  %4020 = vmatpush3.bf16.msra.mxu1 %v4216_v6  ;;  %v1553_v1 = vunpack.i.h.s16 %v4937_v24  ;;  %v4219_v48 = vld [vmem:[%s5423_s3 + $0x50] sm:$0xff]   ;;  %v4966_v40 = vcombine.high %v4937_v24, %v4937_v24 }
 0x1d0   : > { %v1480_v15 = vcombine.high %v1479_v56, %v1479_v56  ;;  %v1497_v35 = vcombine.low %v1318_v16, %v1332_v31  ;;  %4021 = vmatprep.subr.bf16.mxu1 %v4217_v43  ;;  %v1555_v33 = vunpack.i.h.s16 %v4941_v21  ;;  %v4975_v37 = vpack.i.b16 %v4925_v10, %v4894_v50 }
 0x1d1   : > { %v2745_v53 = vcombine.low %v2735_v13, %v2742_v23  ;;  %v2746_v29 = vcombine.high %v2735_v13, %v2742_v23  ;;  %v1668_v41 = vpop.permute.xlu1 %1667  ;;  %v4978_v52 = vpack.i.b16 %v4937_v24, %v1551_v8  ;;  %v4987_v38 = vrot.slane %v1479_v56, %v4368_v46  ;;  %v4220_v56 = vld [vmem:[%s5423_s3 + $0x10] sm:$0xff]  }
 0x1d2   : > { %v4970_v34 = vrot.slane %v1480_v15, %v4368_v46  ;;  %v1635_v26 = vpop.permute.xlu0 %1634  ;;  %v1672_v55 = vsel %vm1304_vm3, %v4763_v44, %v1668_v41  ;;  %v1504_v50 = vrot.slane %v1497_v35, %v4368_v46  ;;  %v4991_v43 = vpack.i.b16 %v4941_v21, %v1553_v1 }
 0x1d3   : > { %v1670_v6 = vsel %vm1304_vm3, %v4766_v61, %v1635_v26  ;;  %v2774_v0 = vrot.slane %v2746_v29, %v4368_v46  ;;  %v2767_v3 = vrot.slane %v2745_v53, %v4368_v46  ;;  %4022 = vmatpush3.bf16.msra.mxu1 %v4218_v59  ;;  %v4994_v36 = vpack.i.b16 %v4854_v30, %v1532_v57  ;;  %v4221_v57 = vld [vmem:[%s5423_s3 + $0x58] sm:$0xff]  }
 0x1d4   : > { %5435 = vst [vmem:[#allocation2_spill] sm:$0xff] %v4970_v34  ;;  %4023 = vmatprep.subr.bf16.mxu1 %v4219_v48  ;;  %v4997_v61 = vpack.i.b16 %v4966_v40, %v1555_v33  ;;  %v1832_v13 = vcombine.low %v4975_v37, %v4978_v52  ;;  %v1675_v31 = vcombine.low %v1670_v6, %v1672_v55 }
 0x1d5   : > { %v2776_v44 = vcombine.low %v2760_v58, %v2774_v0  ;;  %v2775_v60 = vcombine.low %v2753_v9, %v2767_v3  ;;  %v1291_v54 = vpop.permute.xlu1 %1290  ;;  %v1834_v8 = vcombine.low %v4987_v38, %v4970_v34  ;;  %v1841_v30 = vrot.slane %v1831_v62, %v4368_v46 }
 0x1d6   : > { %v1060_v19 = vpop.permute.xlu0 %1059  ;;  %v3843_v16 = vpack.i.b16 %v4823_v20, %v1530_v11  ;;  %v1320_v59 = vsel %vm1304_vm3, %v4742_v14, %v1291_v54  ;;  %v1833_v15 = vcombine.low %v4991_v43, %v4997_v61  ;;  %v1848_v62 = vrot.slane %v1832_v13, %v4368_v46 }
 0x1d7   : > { %3067 = vmatprep.mubr.bf16.mxu0 %v2776_v44  ;;  %v1306_v23 = vsel %vm1304_vm3, %v4395_v45, %v1060_v19  ;;  %v1505_v35 = vcombine.high %v1504_v50, %v1504_v50  ;;  %v1862_v1 = vrot.slane %v1834_v8, %v4368_v46  ;;  %4024 = vmatpush3.bf16.msra.mxu1 %v4220_v56  ;;  %v4222_v45 = vld [vmem:[%s5423_s3 + $0x18] sm:$0xff]   ;;  %v1558_v56 = vunpack.i.h.s16 %v4987_v38  ;;  %v4224_v8 = vld [vmem:[%s5423_s3 + $0x20] sm:$0xff]  }
 0x1d8   : > { %v1347_v9 = vcombine.low %v1306_v23, %v1320_v59  ;;  %3068 = vmatmul.mubr.bf16.vlgmr.msra.gmra.mrb[28].mxu0 %v2775_v60  ;;  %v1855_v48 = vrot.slane %v1833_v15, %v4368_v46  ;;  %v1864_v20 = vcombine.high %v1841_v30, %v1848_v62  ;;  %v5026_v14 = vpack.i.b16 %v4835_v47, %v1534_v42  ;;  %v4223_v47 = vld [vmem:[%s5423_s3 + $0x60] sm:$0xff]  }
 0x1d9   : > { %v2180_v11 = vcombine.low %v3843_v16, %v4994_v36  ;;  %v5031_v53 = vcombine.high %v4987_v38, %v4987_v38  ;;  %v5034_v29 = vrot.slane %v1504_v50, %v4368_v46  ;;  %v1682_v33 = vrot.slane %v1675_v31, %v4368_v46  ;;  %v2631_v58 = vpop.permute.xlu1 %2630  ;;  %4025 = vmatprep.subr.bf16.mxu1 %v4221_v57 }
 0x1da   : > { %v1354_v41 = vrot.slane %v1347_v9, %v4368_v46  ;;  %v2598_v26 = vpop.permute.xlu0 %2597  ;;  %v2635_v55 = vsel %vm1304_vm3, %v4798_v28, %v2631_v58  ;;  %v1866_v6 = vcombine.high %v1855_v48, %v1862_v1  ;;  %v1863_v0 = vcombine.low %v1841_v30, %v1848_v62  ;;  %v4225_v9 = vld [vmem:[%s5423_s3 + $0x68] sm:$0xff]  }
 0x1db   : > { %5436 = vst [vmem:[#allocation3_spill] sm:$0xff] %v5031_v53  ;;  %v2633_v42 = vsel %vm1304_vm3, %v4769_v49, %v2598_v26  ;;  %v5046_v3 = vrot.slane %v1505_v35, %v4368_v46  ;;  %v1865_v44 = vcombine.low %v1855_v48, %v1862_v1  ;;  %v1880_v60 = vrot.slane %v1864_v20, %v4368_v46 }
 0x1dc   : > { %v1355_v50 = vcombine.high %v1354_v41, %v1354_v41  ;;  %v2638_v36 = vcombine.low %v2633_v42, %v2635_v55  ;;  %v1894_v13 = vrot.slane %v1866_v6, %v4368_v46  ;;  %v1560_v31 = vunpack.i.h.s16 %v4970_v34  ;;  %4026 = vmatpush3.bf16.msra.mxu1 %v4222_v45  ;;  %v4227_v55 = vld [vmem:[%s5423_s3 + $0x70] sm:$0xff]  }
 0x1dd   : > { %v1683_v49 = vcombine.high %v1682_v33, %v1682_v33  ;;  %v1887_v54 = vrot.slane %v1865_v44, %v4368_v46  ;;  %4027 = vmatprep.subr.bf16.mxu1 %v4223_v47  ;;  %v1873_v57 = vrot.slane %v1863_v0, %v4368_v46  ;;  %v1496_v16 = vcombine.high %v4970_v34, %v4970_v34 }
 0x1de   : > { %v5053_v28 = vrot.slane %v1355_v50, %v4368_v46  ;;  %v2645_v19 = vrot.slane %v2638_v36, %v4368_v46  ;;  %v1896_v30 = vcombine.low %v1880_v60, %v1894_v13  ;;  %v1562_v23 = vunpack.i.h.s16 %v5031_v53 }
 0x1df   : > { %v5065_v59 = vrot.slane %v1682_v33, %v4368_v46  ;;  %v5068_v15 = vrot.slane %v1354_v41, %v4368_v46  ;;  %v5074_v35 = vpack.i.b16 %v4987_v38, %v4966_v40  ;;  %v1895_v48 = vcombine.low %v1873_v57, %v1887_v54  ;;  %v4226_v33 = vld [vmem:[%s5423_s3 + $0x28] sm:$0xff]  }
 0x1e0   : > { %v1371_v62 = vcombine.high %v5053_v28, %v5053_v28  ;;  %v2646_v1 = vcombine.high %v2645_v19, %v2645_v19  ;;  %2129 = vmatprep.mubr.bf16.mxu1 %v1896_v30  ;;  %v5080_v20 = vpack.i.b16 %v4970_v34, %v1558_v56  ;;  %v5083_v45 = vpack.i.b16 %v5031_v53, %v1560_v31 }
 0x1e1   : > { %5437 = vst [vmem:[#allocation4_spill] sm:$0xff] %v5065_v59  ;;  %4028 = vmatpush3.bf16.msra.mxu1 %v4224_v8  ;;  %v5091_v41 = vrot.slane %v2180_v11, %v4368_v46  ;;  %v5094_v26 = vrot.slane %v2645_v19, %v4368_v46  ;;  %v5096_v58 = vpack.i.b16 %v1496_v16, %v1562_v23  ;;  %v4228_v19 = vld [vmem:[%s5423_s3 + $0x30] sm:$0xff]   ;;  %v1565_v57 = vunpack.i.h.s16 %v5034_v29  ;;  %v4229_v23 = vld [vmem:[%s5423_s3 + $0x78] sm:$0xff]  }
 0x1e2   : > { %2130 = vmatmul.mubr.bf16.gmra.mrb[4].mxu1 %v1895_v48  ;;  %v2777_v47 = vcombine.low %v4937_v24, %v4941_v21  ;;  %v2778_v42 = vcombine.low %v5074_v35, %v5080_v20  ;;  %v5107_v11 = vcombine.high %v5034_v29, %v5034_v29  ;;  %v5110_v6 = vrot.slane %v1683_v49, %v4368_v46 }
 0x1e3   : > { %v3842_v0 = vpack.i.b16 %v4831_v39, %v1371_v62  ;;  %v2780_v50 = vcombine.low %v5034_v29, %v5046_v3  ;;  %4029 = vmatprep.subr.bf16.mxu1 %v4225_v9  ;;  %v5117_v36 = vcombine.high %v5065_v59, %v5065_v59  ;;  %v1370_v44 = vcombine.high %v5068_v15, %v5068_v15 }
 0x1e4   : > { %v5122_v60 = vrot.slane %v2646_v1, %v4368_v46  ;;  %v2779_v13 = vcombine.low %v5083_v45, %v5096_v58  ;;  %v2787_v56 = vrot.slane %v2777_v47, %v4368_v46  ;;  %v2794_v31 = vrot.slane %v2778_v42, %v4368_v46 }
 0x1e5   : > { %5438 = vst [vmem:[#allocation5_spill] sm:$0xff] %v5117_v36  ;;  %v2808_v49 = vrot.slane %v2780_v50, %v4368_v46  ;;  %4030 = vmatpush3.bf16.msra.mxu1 %v4226_v33  ;;  %v5136_v54 = vcombine.high %v5094_v26, %v5094_v26  ;;  %v5141_v30 = vcombine.high %v5046_v3, %v5046_v3  ;;  %v1567_v48 = vunpack.i.h.s16 %v5046_v3 }
 0x1e6   : > { %5439 = vst [vmem:[#allocation6_spill] sm:$0xff] %v5122_v60  ;;  %v2801_v8 = vrot.slane %v2779_v13, %v4368_v46  ;;  %4031 = vmatprep.subr.bf16.mxu1 %v4227_v55  ;;  %v5147_v62 = vcombine.low %v1370_v44, %v3842_v0  ;;  %v2810_v9 = vcombine.high %v2787_v56, %v2794_v31  ;;  %v1569_v50 = vunpack.i.h.s16 %v5107_v11  ;;  %v4230_v44 = vld [vmem:[%s5423_s3 + $0x38] sm:$0xff]  }
 0x1e7   : > { %v2809_v1 = vcombine.low %v2787_v56, %v2794_v31  ;;  %v5152_v33 = vcombine.high %v5122_v60, %v5122_v60  ;;  %v5158_v5 = vpack.i.b16 %v5034_v29, %v1496_v16  ;;  %v5161_v0 = vpack.i.b16 %v5046_v3, %v1565_v57  ;;  %v4231_v16 = vld [vmem:[%s5423_s3 + $0x1c0] sm:$0xff]  }
 0x1e8   : > { %v2812_v47 = vcombine.high %v2801_v8, %v2808_v49  ;;  %v2811_v42 = vcombine.low %v2801_v8, %v2808_v49  ;;  %v2826_v55 = vrot.slane %v2810_v9, %v4368_v46  ;;  %v5169_v49 = vpack.i.b16 %v5107_v11, %v1567_v48 }
 0x1e9   : > { %v2819_v13 = vrot.slane %v2809_v1, %v4368_v46  ;;  %5440 = vst [vmem:[#allocation7_spill] sm:$0xff] %v5158_v5  ;;  %5441 = vst [vmem:[#allocation8_spill] sm:$0xff] %v5161_v0  ;;  %4032 = vmatpush3.bf16.msra.mxu1 %v4228_v19  ;;  %v5172_v8 = vpack.i.b16 %v5141_v30, %v1569_v50  ;;  %v1897_v19 = vcombine.low %v5031_v53, %v5158_v5 }
 0x1ea   : > { %v2840_v56 = vrot.slane %v2812_v47, %v4368_v46  ;;  %v2833_v31 = vrot.slane %v2811_v42, %v4368_v46  ;;  %5442 = vst [vmem:[#allocation9_spill] sm:$0xff] %v5169_v49  ;;  %4033 = vmatprep.subr.bf16.mxu1 %v4229_v23  ;;  %v1900_v57 = vcombine.low %v5110_v6, %v5117_v36  ;;  %v1701_v1 = vunpack.i.h.s16 %v5065_v59 }
 0x1eb   : > { %v5183_v9 = vcombine.high %v5110_v6, %v5110_v6  ;;  %v1898_v23 = vcombine.low %v5161_v0, %v5169_v49  ;;  %v1899_v42 = vcombine.low %v5172_v8, %v5065_v59  ;;  %v1907_v50 = vrot.slane %v1897_v19, %v4368_v46 }
 0x1ec   : > { %v2842_v48 = vcombine.low %v2826_v55, %v2840_v56  ;;  %v2841_v47 = vcombine.low %v2819_v13, %v2833_v31  ;;  %v1928_v39 = vrot.slane %v1900_v57, %v4368_v46  ;;  %v1703_v34 = vunpack.i.h.s16 %v5110_v6 }
 0x1ed   : > { %v1706_v40 = vunpack.i.l.s16 %v5183_v9  ;;  %4034 = vmatpush3.bf16.msra.mxu1 %v4230_v44  ;;  %v1914_v53 = vrot.slane %v1898_v23, %v4368_v46  ;;  %v1921_v55 = vrot.slane %v1899_v42, %v4368_v46  ;;  %v1705_v13 = vunpack.i.h.s16 %v5117_v36 }
 0x1ee   : > { %3075 = vmatprep.mubr.bf16.mxu0 %v2842_v48  ;;  %v3903_v56 = vpack.i.b16 %v5065_v59, %v5141_v30  ;;  %4099 = vmatprep.subr.bf16.mxu1 %v4231_v16  ;;  %v3904_v19 = vpack.i.b16 %v5110_v6, %v1701_v1  ;;  %v3905_v57 = vpack.i.b16 %v5117_v36, %v1703_v34 }
 0x1ef   : > { %3076 = vmatmul.mubr.bf16.gmra.mrb[32].mxu0 %v2841_v47  ;;  %v1969_v31 = vrot.slane %v1706_v40, %v4368_v46  ;;  %v2846_v44 = vcombine.low %v5122_v60, %v5136_v54  ;;  %v1930_v48 = vcombine.high %v1907_v50, %v1914_v53  ;;  %v1932_v23 = vcombine.high %v1921_v55, %v1928_v39 }
 0x1f0   : > { %v1929_v5 = vcombine.low %v1907_v50, %v1914_v53  ;;  %v1931_v42 = vcombine.low %v1921_v55, %v1928_v39  ;;  %v3906_v49 = vpack.i.b16 %v5183_v9, %v1705_v13  ;;  %v2843_v59 = vcombine.low %v5107_v11, %v3903_v56 }
 0x1f1   : > { %v1970_v0 = vcombine.high %v1969_v31, %v1969_v31  ;;  %v2844_v16 = vcombine.low %v3904_v19, %v3905_v57  ;;  %v1946_v47 = vrot.slane %v1930_v48, %v4368_v46  ;;  %v1960_v40 = vrot.slane %v1932_v23, %v4368_v46 }
 0x1f2   : > { %v1939_v1 = vrot.slane %v1929_v5, %v4368_v46  ;;  %v1953_v34 = vrot.slane %v1931_v42, %v4368_v46  ;;  %v2845_v36 = vcombine.low %v3906_v49, %v5094_v26  ;;  %v2853_v60 = vrot.slane %v2843_v59, %v4368_v46 }
 0x1f3   : > { %v2860_v53 = vrot.slane %v2844_v16, %v4368_v46  ;;  %v5443_v39 = vcombine.low %v5026_v14, %v4838_v17  ;;  %v1962_v55 = vcombine.low %v1946_v47, %v1960_v40  ;;  %v2874_v56 = vrot.slane %v2846_v44, %v4368_v46 }
 0x1f4   : > { %v1961_v13 = vcombine.low %v1939_v1, %v1953_v34  ;;  %v2867_v19 = vrot.slane %v2845_v36, %v4368_v46  ;;  %v1984_v49 = vrot.slane %v1970_v0, %v4368_v46  ;;  %v5444_v59 = vcombine.low %v5068_v15, %v5053_v28 }
 0x1f5   : > { %v2209_v50 = vrot.slane %v5443_v39, %v4368_v46  ;;  %v2876_v5 = vcombine.high %v2853_v60, %v2860_v53  ;;  %v2875_v57 = vcombine.low %v2853_v60, %v2860_v53  ;;  %2137 = vmatprep.mubr.bf16.mxu1 %v1962_v55  ;;  %v2195_v17 = vrot.slane %v5147_v62, %v4368_v46 }
 0x1f6   : > { %v2188_v48 = vrot.slane %v5444_v59, %v4368_v46  ;;  %v2669_v14 = vunpack.i.l.s16 %v5152_v33  ;;  %2138 = vmatmul.mubr.bf16.gmra.mrb[8].mxu1 %v1961_v13  ;;  %v2878_v23 = vcombine.high %v2867_v19, %v2874_v56  ;;  %v2877_v44 = vcombine.low %v2867_v19, %v2874_v56 }
 0x1f7   : > { %v2213_v36 = vcombine.high %v5091_v41, %v2209_v50  ;;  %2145 = vmatprep.mubr.bf16.mxu1 %v1984_v49  ;;  %v2892_v60 = vrot.slane %v2876_v5, %v4368_v46  ;;  %v2885_v0 = vrot.slane %v2875_v57, %v4368_v46  ;;  %v2245_v62 = vcombine.low %v4888_v18, %v4905_v63 }
 0x1f8   : > { %v2211_v42 = vcombine.high %v2188_v48, %v2195_v17  ;;  %v2915_v16 = vrot.slane %v2669_v14, %v4368_v46  ;;  %v2906_v28 = vrot.slane %v2878_v23, %v4368_v46  ;;  %v2899_v15 = vrot.slane %v2877_v44, %v4368_v46 }
 0x1f9   : > { %v2246_v47 = vcombine.low %v4908_v22, %v4916_v32  ;;  %v2210_v39 = vcombine.low %v2188_v48, %v2195_v17  ;;  %v2247_v55 = vcombine.low %v4925_v10, %v4937_v24  ;;  %v2212_v13 = vcombine.low %v5091_v41, %v2209_v50 }
 0x1fa   : > { %v2227_v40 = vrot.slane %v2211_v42, %v4368_v46  ;;  %v2916_v1 = vcombine.high %v2915_v16, %v2915_v16  ;;  %v2908_v34 = vcombine.low %v2892_v60, %v2906_v28  ;;  %v2907_v53 = vcombine.low %v2885_v0, %v2899_v15 }
 0x1fb   : > { %v2241_v56 = vrot.slane %v2213_v36, %v4368_v46  ;;  %v2261_v19 = vrot.slane %v2245_v62, %v4368_v46  ;;  %v1977_v18 = vrot.slane %v1969_v31, %v4368_v46  ;;  %v2268_v22 = vrot.slane %v2246_v47, %v4368_v46  ;;  %v3171_v36 = vpop.permute.xlu1 %3170 }
 0x1fc   : > { %3083 = vmatprep.mubr.bf16.mxu0 %v2908_v34  ;;  %v2930_v63 = vrot.slane %v2916_v1, %v4368_v46  ;;  %v2275_v32 = vrot.slane %v2247_v55, %v4368_v46  ;;  %v5445_v10 = vcombine.low %v4845_v25, %v4849_v12  ;;  %v2313_v41 = vcombine.low %v5046_v3, %v5107_v11 }
 0x1fd   : > { %3084 = vmatmul.mubr.bf16.gmra.mrb[36].mxu0 %v2907_v53  ;;  %v2243_v5 = vcombine.low %v2227_v40, %v2241_v56  ;;  %v2220_v31 = vrot.slane %v2210_v39, %v4368_v46  ;;  %v2311_v49 = vcombine.low %v5080_v20, %v5083_v45  ;;  %v2312_v59 = vcombine.low %v5096_v58, %v5034_v29  ;;  %v3138_v29 = vpop.permute.xlu0 %3137  ;;  %v4232_v58 = vld [vmem:[%s5423_s3 + $0x180] sm:$0xff]  }
 0x1fe   : > { %v2254_v24 = vrot.slane %v5445_v10, %v4368_v46  ;;  %2146 = vmatmul.mubr.bf16.gmra.mrb[12].mxu1 %v1977_v18  ;;  %3091 = vmatprep.mubr.bf16.mxu0 %v2930_v63  ;;  %v2279_v50 = vcombine.high %v2268_v22, %v2275_v32  ;;  %v2234_v48 = vrot.slane %v2212_v13, %v4368_v46  ;;  %v1570_v55 = vunpack.i.l.s16 %v5141_v30  ;;  %v4236_v63 = vld [vmem:[%s5423_s3 + $0x190] sm:$0xff]  }
 0x1ff   : > { %2534 = vmatprep.mubr.bf16.mxu1 %v2243_v5  ;;  %v2310_v25 = vcombine.low %v4941_v21, %v5074_v35  ;;  %v5263_v3 = vrot.slane %v2313_v41, %v4368_v46  ;;  %v3251_v11 = vcombine.low %v4868_v51, %v4878_v7  ;;  %v3252_v17 = vcombine.low %v4882_v27, %v4975_v37  ;;  %v4233_v51 = vld [vmem:[%s5423_s3 + $0x1c8] sm:$0xff]  }
 0x200   : > { %v2277_v57 = vcombine.high %v2254_v24, %v2261_v19  ;;  %v2307_v12 = vrot.slane %v2279_v50, %v4368_v46  ;;  %v2242_v20 = vcombine.low %v2220_v31, %v2234_v48  ;;  %v2923_v45 = vrot.slane %v2915_v16, %v4368_v46 }
 0x201   : > { %v2276_v35 = vcombine.low %v2254_v24, %v2261_v19  ;;  %v2327_v14 = vrot.slane %v2311_v49, %v4368_v46  ;;  %v2334_v23 = vrot.slane %v2312_v59, %v4368_v46  ;;  %v2278_v7 = vcombine.low %v2268_v22, %v2275_v32  ;;  %v4237_v32 = vld [vmem:[%s5423_s3 + $0x1d8] sm:$0xff]   ;;  %v4239_v59 = vld [vmem:[%s5423_s3 + $0x1e0] sm:$0xff]  }
 0x202   : > { %v2293_v21 = vrot.slane %v2277_v57, %v4368_v46  ;;  %v2320_v27 = vrot.slane %v2310_v25, %v4368_v46  ;;  %v3253_v37 = vcombine.low %v4978_v52, %v4991_v43  ;;  %v3254_v44 = vcombine.low %v4997_v61, %v4987_v38  ;;  %v4234_v38 = vld [vmem:[%s5423_s3 + $0x188] sm:$0xff]   ;;  %v4238_v57 = vld [vmem:[%s5423_s3 + $0x198] sm:$0xff]  }
 0x203   : > { %v2345_v0 = vcombine.high %v2334_v23, %v5263_v3  ;;  %v3261_v42 = vrot.slane %v3251_v11, %v4368_v46  ;;  %v3268_v16 = vrot.slane %v3252_v17, %v4368_v46  ;;  %v3173_v28 = vsel %vm1304_vm3, %v4786_v2, %v3138_v29  ;;  %v4235_v2 = vld [vmem:[%s5423_s3 + $0x1d0] sm:$0xff]   ;;  %v4241_v29 = vld [vmem:[%s5423_s3 + $0x1e8] sm:$0xff]  }
 0x204   : > { %v2309_v60 = vcombine.low %v2293_v21, %v2307_v12  ;;  %v3275_v15 = vrot.slane %v3253_v37, %v4368_v46  ;;  %v3282_v52 = vrot.slane %v3254_v44, %v4368_v46  ;;  %v2343_v43 = vcombine.high %v2320_v27, %v2327_v14  ;;  %v5446_v21 = vld [vmem:[#allocation9_spill] sm:$0xff]  ;;  %v4242_v37 = vld [vmem:[%s5423_s3 + $0x1a8] sm:$0xff]   ;;  %v5449_v44 = vld [vmem:[#allocation8_spill] sm:$0xff] }
 0x205   : > { %3092 = vmatmul.mubr.bf16.gmra.mrb[40].mxu0 %v2923_v45  ;;  %v3283_v61 = vcombine.low %v3261_v42, %v3268_v16  ;;  %v3284_v62 = vcombine.high %v3261_v42, %v3268_v16  ;;  %v3175_v47 = vsel %vm1304_vm3, %v4789_v4, %v3171_v36  ;;  %v2300_v40 = vrot.slane %v2278_v7, %v4368_v46  ;;  %v5450_v36 = vld [vmem:[#allocation7_spill] sm:$0xff] }
 0x206   : > { %2535 = vmatmul.mubr.bf16.vlgmr.msra.gmra.mrb[16].mxu1 %v2242_v20  ;;  %v3285_v1 = vcombine.low %v3275_v15, %v3282_v52  ;;  %v3286_v34 = vcombine.high %v3275_v15, %v3282_v52  ;;  %v2286_v53 = vrot.slane %v2276_v35, %v4368_v46  ;;  %v2373_v39 = vrot.slane %v2345_v0, %v4368_v46  ;;  %v5451_v16 = vld [vmem:[#allocation3_spill] sm:$0xff] }
 0x207   : > { %4100 = vmatpush3.bf16.msra.mxu1 %v4232_v58  ;;  %2542 = vmatprep.mubr.bf16.mxu1 %v2309_v60  ;;  %v5304_v13 = vrot.slane %v3284_v62, %v4368_v46  ;;  %v5310_v56 = vrot.slane %v3283_v61, %v4368_v46  ;;  %v3178_v18 = vcombine.low %v3173_v28, %v3175_v47  ;;  %v2668_v11 = vunpack.i.h.s16 %v5136_v54  ;;  %v5452_v28 = vld [vmem:[#allocation2_spill] sm:$0xff] }
 0x208   : > { %4101 = vmatprep.subr.bf16.mxu1 %v4233_v51  ;;  %v5307_v4 = vrot.slane %v3286_v34, %v4368_v46  ;;  %v5313_v19 = vrot.slane %v3285_v1, %v4368_v46  ;;  %v2359_v30 = vrot.slane %v2343_v43, %v4368_v46  ;;  %v2308_v22 = vcombine.low %v2286_v53, %v2300_v40  ;;  %v5448_v51 = vld [vmem:[#allocation6_spill] sm:$0xff] }
 0x209   : > { %v2344_v5 = vcombine.low %v2334_v23, %v5263_v3  ;;  %v2382_v31 = vrot.slane %v1570_v55, %v4368_v46  ;;  %v2342_v50 = vcombine.low %v2320_v27, %v2327_v14  ;;  %v3185_v49 = vrot.slane %v3178_v18, %v4368_v46  ;;  %v4240_v3 = vld [vmem:[%s5423_s3 + $0x1a0] sm:$0xff]   ;;  %v5447_v14 = vld [vmem:[#allocation4_spill] sm:$0xff]  ;;  %v5453_v55 = vld [vmem:[#allocation5_spill] sm:$0xff] }
 0x20a   : > { %v3316_v10 = vcombine.low %v5304_v13, %v5307_v4  ;;  %v3315_v24 = vcombine.low %v5310_v56, %v5313_v19  ;;  %v2375_v41 = vcombine.low %v2359_v30, %v2373_v39  ;;  %v3319_v35 = vcombine.low %v5446_v21, %v5172_v8 }
 0x20b   : > { %4102 = vmatpush3.bf16.msra.mxu1 %v4234_v38  ;;  %v2366_v48 = vrot.slane %v2344_v5, %v4368_v46  ;;  %v2383_v25 = vcombine.high %v2382_v31, %v2382_v31  ;;  %v2352_v12 = vrot.slane %v2342_v50, %v4368_v46  ;;  %v3186_v17 = vcombine.high %v3185_v49, %v3185_v49 }
 0x20c   : > { %4103 = vmatprep.subr.bf16.mxu1 %v4235_v2  ;;  %v3193_v20 = vrot.slane %v3185_v49, %v4368_v46  ;;  %v3320_v23 = vcombine.low %v5447_v14, %v5110_v6  ;;  %v2666_v7 = vunpack.i.h.s16 %v5448_v51  ;;  %v2664_v27 = vunpack.i.h.s16 %v5094_v26  ;;  %v4243_v6 = vld [vmem:[%s5423_s3 + $0x1f0] sm:$0xff]  }
 0x20d   : > { %v2374_v45 = vcombine.low %v2352_v12, %v2366_v48  ;;  %v2397_v58 = vrot.slane %v2383_v25, %v4368_v46  ;;  %v3318_v60 = vcombine.low %v5450_v36, %v5449_v44  ;;  %v3959_v0 = vpack.i.b16 %v5152_v33, %v2668_v11  ;;  %v4244_v33 = vld [vmem:[%s5423_s3 + $0x1b0] sm:$0xff]  }
 0x20e   : > { %2543 = vmatmul.mubr.bf16.gmra.mrb[20].mxu1 %v2308_v22  ;;  %v3200_v8 = vrot.slane %v3186_v17, %v4368_v46  ;;  %v3201_v42 = vcombine.high %v3193_v20, %v3193_v20  ;;  %v3317_v15 = vcombine.low %v5452_v28, %v5451_v16  ;;  %v3341_v52 = vrot.slane %v3319_v35, %v4368_v46 }
 0x20f   : > { %4104 = vmatpush3.bf16.msra.mxu1 %v4236_v63  ;;  %2550 = vmatprep.mubr.bf16.mxu1 %v2375_v41  ;;  %v3348_v38 = vrot.slane %v3320_v23, %v4368_v46  ;;  %v3958_v43 = vpack.i.b16 %v5136_v54, %v2666_v7  ;;  %v3334_v61 = vrot.slane %v3318_v60, %v4368_v46  ;;  %v4245_v54 = vld [vmem:[%s5423_s3 + $0x1f8] sm:$0xff]  }
 0x210   : > { %4105 = vmatprep.subr.bf16.mxu1 %v4237_v32  ;;  %v3956_v62 = vpack.i.b16 %v5094_v26, %v5183_v9  ;;  %v3957_v47 = vpack.i.b16 %v5448_v51, %v2664_v27  ;;  %v3385_v2 = vcombine.low %v3959_v0, %v3193_v20  ;;  %v2390_v40 = vrot.slane %v2382_v31, %v4368_v46  ;;  %v4246_v26 = vld [vmem:[%s5423_s3 + $0x1b8] sm:$0xff]  }
 0x211   : > { %v3386_v1 = vcombine.low %v3200_v8, %v3201_v42  ;;  %v3327_v34 = vrot.slane %v3317_v15, %v4368_v46  ;;  %v3352_v53 = vcombine.high %v3341_v52, %v3348_v38  ;;  %v3351_v5 = vcombine.low %v3341_v52, %v3348_v38 }
 0x212   : > { %v3384_v39 = vcombine.low %v3957_v47, %v3958_v43  ;;  %v3383_v13 = vcombine.low %v5453_v55, %v3956_v62  ;;  %v3407_v63 = vrot.slane %v3385_v2, %v4368_v46  ;;  %v3202_v50 = vcombine.high %v3200_v8, %v3200_v8 }
 0x213   : > { %4106 = vmatpush3.bf16.msra.mxu1 %v4238_v57  ;;  %v3350_v9 = vcombine.high %v3327_v34, %v3334_v61  ;;  %v3380_v4 = vrot.slane %v3352_v53, %v4368_v46  ;;  %v3414_v30 = vrot.slane %v3386_v1, %v4368_v46  ;;  %v3349_v57 = vcombine.low %v3327_v34, %v3334_v61 }
 0x214   : > { %4107 = vmatprep.subr.bf16.mxu1 %v4239_v59  ;;  %v3400_v18 = vrot.slane %v3384_v39, %v4368_v46  ;;  %v3393_v32 = vrot.slane %v3383_v13, %v4368_v46  ;;  %v3373_v49 = vrot.slane %v3351_v5, %v4368_v46  ;;  %v3209_v25 = vunpack.i.l.s16 %v3202_v50 }
 0x215   : > { %v3366_v22 = vrot.slane %v3350_v9, %v4368_v46  ;;  %v3418_v31 = vcombine.high %v3407_v63, %v3414_v30  ;;  %v3359_v12 = vrot.slane %v3349_v57, %v4368_v46  ;;  %v3417_v17 = vcombine.low %v3407_v63, %v3414_v30 }
 0x216   : > { %2551 = vmatmul.mubr.bf16.gmra.mrb[24].mxu1 %v2374_v45  ;;  %v3416_v41 = vcombine.high %v3393_v32, %v3400_v18  ;;  %v3415_v11 = vcombine.low %v3393_v32, %v3400_v18  ;;  %v3455_v45 = vrot.slane %v3209_v25, %v4368_v46 }
 0x217   : > { %4108 = vmatpush3.bf16.msra.mxu1 %v4240_v3  ;;  %2558 = vmatprep.mubr.bf16.mxu1 %v2397_v58  ;;  %v3446_v48 = vrot.slane %v3418_v31, %v4368_v46  ;;  %v3381_v3 = vcombine.low %v3359_v12, %v3373_v49  ;;  %v3439_v19 = vrot.slane %v3417_v17, %v4368_v46 }
 0x218   : > { %4109 = vmatprep.subr.bf16.mxu1 %v4241_v29  ;;  %v3432_v59 = vrot.slane %v3416_v41, %v4368_v46  ;;  %v3425_v56 = vrot.slane %v3415_v11, %v4368_v46  ;;  %v3463_v21 = vrot.slane %v3455_v45, %v4368_v46 }
 0x21a   : > { %v3448_v20 = vcombine.low %v3432_v59, %v3446_v48  ;;  %v3447_v29 = vcombine.low %v3425_v56, %v3439_v19 }
 0x21b   : > { %4110 = vmatpush3.bf16.msra.mxu1 %v4242_v37 }
 0x21c   : > { %4111 = vmatprep.subr.bf16.mxu1 %v4243_v6 }
 0x21e   : > { %2559 = vmatmul.mubr.bf16.gmra.mrb[28].mxu1 %v2390_v40 }
 0x21f   : > { %4112 = vmatpush3.bf16.msra.mxu1 %v4244_v33  ;;  %3607 = vmatprep.mubr.bf16.mxu1 %v3316_v10  ;;  %v3382_v10 = vcombine.low %v3366_v22, %v3380_v4 }
 0x220   : > { %4113 = vmatprep.subr.bf16.mxu1 %v4245_v54 }
 0x223   : > { %4114 = vmatpush3.bf16.msra.mxu1 %v4246_v26 }
 0x226   : > { %3608 = vmatmul.mubr.bf16.vlgmr.msra.gmra.mrb[32].mxu1 %v3315_v24  ;;  %v3456_v24 = vcombine.high %v3455_v45, %v3455_v45 }
 0x227   : > { %3615 = vmatprep.mubr.bf16.mxu1 %v3382_v10 }
 0x228   : > { %v3470_v58 = vrot.slane %v3456_v24, %v4368_v46 }
 0x22e   : > { %3616 = vmatmul.mubr.bf16.gmra.mrb[36].mxu1 %v3381_v3 }
 0x22f   : > { %3623 = vmatprep.mubr.bf16.mxu1 %v3448_v20 }
 0x236   : > { %3624 = vmatmul.mubr.bf16.gmra.mrb[40].mxu1 %v3447_v29 }
 0x237   : > { %3631 = vmatprep.mubr.bf16.mxu1 %v3470_v58 }
 0x23e   : > { %3632 = vmatmul.mubr.bf16.gmra.mrb[44].mxu1 %v3463_v21 }
 0x2a1   : > { %v3995_v35 = vpop.f32.mrb[0].mxu1 }
 0x2a2   : > { %v3996_v14 = vpop.f32.mrb[1].mxu1 }
 0x2a3   : > { %v3997_v23 = vadd.f32 %v3996_v14, %v3995_v35  ;;  %v3998_v51 = vpop.f32.mrb[2].mxu1 }
 0x2a4   : > { %v3999_v7 = vpop.f32.mrb[3].mxu1 }
 0x2a5   : > { %v4000_v27 = vadd.f32 %v3999_v7, %v3998_v51 }
 0x2ab   : > { %v4075_v37 = vpop.f32.mrb[28].mxu0 }
 0x2ac   : > { %v4076_v44 = vpop.f32.mrb[29].mxu0 }
 0x2ad   : > { %v4077_v36 = vadd.f32 %v4076_v44, %v4075_v37  ;;  %v4078_v60 = vpop.f32.mrb[30].mxu0 }
 0x2ae   : > { %v4079_v0 = vpop.f32.mrb[31].mxu0 }
 0x2af   : > { %v4080_v8 = vadd.f32 %v4079_v0, %v4078_v60 }
 0x2b5   : > { %v4001_v42 = vpop.f32.mrb[4].mxu1 }
 0x2b6   : > { %v4002_v6 = vpop.f32.mrb[5].mxu1 }
 0x2b7   : > { %v4003_v16 = vadd.f32 %v4002_v6, %v4001_v42  ;;  %v4004_v28 = vpop.f32.mrb[6].mxu1 }
 0x2b8   : > { %v4005_v15 = vpop.f32.mrb[7].mxu1 }
 0x2b9   : > { %v4006_v52 = vadd.f32 %v4005_v15, %v4004_v28 }
 0x2c2   : > { %v4081_v46 = vpop.f32.mrb[32].mxu0 }
 0x2c3   : > { %v4082_v38 = vpop.f32.mrb[33].mxu0 }
 0x2c4   : > { %v4083_v43 = vadd.f32 %v4082_v38, %v4081_v46  ;;  %v4084_v33 = vpop.f32.mrb[34].mxu0 }
 0x2c5   : > { %v4085_v61 = vpop.f32.mrb[35].mxu0 }
 0x2c6   : > { %v4086_v62 = vadd.f32 %v4085_v61, %v4084_v33 }
 0x2c9   : > { %v4007_v47 = vpop.f32.mrb[8].mxu1 }
 0x2ca   : > { %v4008_v2 = vpop.f32.mrb[9].mxu1 }
 0x2cb   : > { %v4009_v40 = vadd.f32 %v4008_v2, %v4007_v47  ;;  %v4010_v54 = vpop.f32.mrb[10].mxu1 }
 0x2cc   : > { %v4011_v1 = vpop.f32.mrb[11].mxu1 }
 0x2cd   : > { %v4012_v34 = vadd.f32 %v4011_v1, %v4010_v54 }
 0x2d0   : > { %v4087_v53 = vpop.f32.mrb[36].mxu0 }
 0x2d1   : > { %v4013_v39 = vpop.f32.mrb[12].mxu1  ;;  %v4088_v26 = vpop.f32.mrb[37].mxu0 }
 0x2d2   : > { %v4014_v9 = vpop.f32.mrb[13].mxu1  ;;  %v4089_v55 = vadd.f32 %v4088_v26, %v4087_v53  ;;  %v4090_v13 = vpop.f32.mrb[38].mxu0 }
 0x2d3   : > { %v4015_v4 = vadd.f32 %v4014_v9, %v4013_v39  ;;  %v4016_v18 = vpop.f32.mrb[14].mxu1  ;;  %v4091_v63 = vpop.f32.mrb[39].mxu0 }
 0x2d4   : > { %v4017_v30 = vpop.f32.mrb[15].mxu1  ;;  %v4092_v22 = vadd.f32 %v4091_v63, %v4090_v13 }
 0x2d8   : > { %v4093_v32 = vpop.f32.mrb[40].mxu0 }
 0x2d9   : > { %v4035_v5 = vpop.f32.mrb[16].mxu1  ;;  %v4094_v10 = vpop.f32.mrb[41].mxu0 }
 0x2da   : > { %v4036_v41 = vpop.f32.mrb[17].mxu1  ;;  %v4095_v31 = vadd.f32 %v4094_v10, %v4093_v32  ;;  %v4096_v50 = vpop.f32.mrb[42].mxu0 }
 0x2db   : > { %v4037_v57 = vadd.f32 %v4036_v41, %v4035_v5  ;;  %v4038_v49 = vpop.f32.mrb[18].mxu1  ;;  %v4097_v59 = vpop.f32.mrb[43].mxu0 }
 0x2dc   : > { %v4039_v48 = vpop.f32.mrb[19].mxu1 }
 0x2dd   : > { %v2537_v25 = vadd.f32 %v4037_v57, %v3997_v23  ;;  %v4040_v12 = vadd.f32 %v4039_v48, %v4038_v49 }
 0x2df   : > { %v2540_v3 = vadd.f32 %v4040_v12, %v4000_v27  ;;  %v3099_v11 = vadd.f32 %v4077_v36, %v2537_v25 }
 0x2e1   : > { %v4041_v17 = vpop.f32.mrb[20].mxu1  ;;  %v3100_v20 = vadd.f32 %v4080_v8, %v2540_v3 }
 0x2e2   : > { %v4042_v45 = vpop.f32.mrb[21].mxu1 }
 0x2e3   : > { %v4043_v56 = vadd.f32 %v4042_v45, %v4041_v17  ;;  %v4044_v19 = vpop.f32.mrb[22].mxu1 }
 0x2e4   : > { %v4045_v24 = vpop.f32.mrb[23].mxu1 }
 0x2e5   : > { %v2545_v29 = vadd.f32 %v4043_v56, %v4003_v16  ;;  %v4046_v58 = vadd.f32 %v4045_v24, %v4044_v19 }
 0x2e7   : > { %v2548_v21 = vadd.f32 %v4046_v58, %v4006_v52  ;;  %v3101_v35 = vadd.f32 %v4083_v43, %v2545_v29 }
 0x2e9   : > { %v4047_v14 = vpop.f32.mrb[24].mxu1  ;;  %v3102_v51 = vadd.f32 %v4086_v62, %v2548_v21  ;;  %v3976_v62 = vld [vmem:[%s5424_s4] ss:$0 sm:$0xff] }
 0x2ea   : > { %v4048_v7 = vpop.f32.mrb[25].mxu1 }
 0x2eb   : > { %v4049_v37 = vadd.f32 %v4048_v7, %v4047_v14  ;;  %v4050_v44 = vpop.f32.mrb[26].mxu1 }
 0x2ec   : > { %v4051_v60 = vpop.f32.mrb[27].mxu1 }
 0x2ed   : > { %v2553_v23 = vadd.f32 %v4049_v37, %v4009_v40  ;;  %v4052_v27 = vadd.f32 %v4051_v60, %v4050_v44 }
 0x2ef   : > { %v2556_v36 = vadd.f32 %v4052_v27, %v4012_v34  ;;  %v3103_v0 = vadd.f32 %v4089_v55, %v2553_v23 }
 0x2f1   : > { %v4053_v8 = vpop.f32.mrb[28].mxu1  ;;  %v3104_v42 = vadd.f32 %v4092_v22, %v2556_v36 }
 0x2f2   : > { %v4054_v6 = vpop.f32.mrb[29].mxu1 }
 0x2f3   : > { %v4055_v28 = vadd.f32 %v4054_v6, %v4053_v8  ;;  %v4056_v15 = vpop.f32.mrb[30].mxu1 }
 0x2f4   : > { %v4057_v16 = vpop.f32.mrb[31].mxu1 }
 0x2f5   : > { %v2561_v46 = vadd.f32 %v4055_v28, %v4015_v4 }
 0x2f7   : > { %v3105_v52 = vadd.f32 %v4095_v31, %v2561_v46 }
 0x2f9   : > { %v4115_v38 = vpop.f32.mrb[32].mxu1 }
 0x2fa   : > { %v4116_v43 = vpop.f32.mrb[33].mxu1 }
 0x2fb   : > { %v4117_v33 = vadd.f32 %v4116_v43, %v4115_v38  ;;  %v4118_v61 = vpop.f32.mrb[34].mxu1 }
 0x2fc   : > { %v4119_v47 = vpop.f32.mrb[35].mxu1 }
 0x2fd   : > { %v3639_v2 = vadd.f32 %v4117_v33, %v3099_v11  ;;  %v4120_v40 = vadd.f32 %v4119_v47, %v4118_v61 }
 0x2ff   : > { %v3653_v54 = vadd.f32 %v3976_v62, %v3639_v2  ;;  %v3640_v1 = vadd.f32 %v4120_v40, %v3100_v20 }
 0x301   : > { %v3660_v34 = vmax.f32 %v3653_v54, 0.0  ;;  %v3654_v53 = vadd.f32 %v3976_v62, %v3640_v1  ;;  %v4121_v39 = vpop.f32.mrb[36].mxu1 }
 0x302   : > { %v4122_v26 = vpop.f32.mrb[37].mxu1 }
 0x303   : > { %3667 = vst [vmem:[%s5408_s21] sm:$0xff] %v3660_v34  ;;  %v3661_v9 = vmax.f32 %v3654_v53, 0.0  ;;  %v4123_v55 = vadd.f32 %v4122_v26, %v4121_v39  ;;  %v4124_v13 = vpop.f32.mrb[38].mxu1 }
 0x304   : > { %v4125_v4 = vpop.f32.mrb[39].mxu1 }
 0x305   : > { %3668 = vst [vmem:[%s5408_s21 + $0x8] sm:$0xff] %v3661_v9  ;;  %v3641_v18 = vadd.f32 %v4123_v55, %v3101_v35  ;;  %v4126_v63 = vadd.f32 %v4125_v4, %v4124_v13 }
 0x307   : > { %v3655_v30 = vadd.f32 %v3976_v62, %v3641_v18  ;;  %v3642_v22 = vadd.f32 %v4126_v63, %v3102_v51 }
 0x309   : > { %v3662_v32 = vmax.f32 %v3655_v30, 0.0  ;;  %v3656_v5 = vadd.f32 %v3976_v62, %v3642_v22  ;;  %v4127_v10 = vpop.f32.mrb[40].mxu1 }
 0x30a   : > { %v4128_v41 = vpop.f32.mrb[41].mxu1 }
 0x30b   : > { %3669 = vst [vmem:[%s5408_s21 + $0x10] sm:$0xff] %v3662_v32  ;;  %v3663_v31 = vmax.f32 %v3656_v5, 0.0  ;;  %v4129_v50 = vadd.f32 %v4128_v41, %v4127_v10  ;;  %v4130_v57 = vpop.f32.mrb[42].mxu1 }
 0x30c   : > { %v4131_v49 = vpop.f32.mrb[43].mxu1 }
 0x30d   : > { %3670 = vst [vmem:[%s5408_s21 + $0x18] sm:$0xff] %v3663_v31  ;;  %v3643_v59 = vadd.f32 %v4129_v50, %v3103_v0  ;;  %v4132_v48 = vadd.f32 %v4131_v49, %v4130_v57 }
 0x30f   : > { %v3657_v25 = vadd.f32 %v3976_v62, %v3643_v59  ;;  %v3644_v12 = vadd.f32 %v4132_v48, %v3104_v42 }
 0x311   : > { %v3664_v3 = vmax.f32 %v3657_v25, 0.0  ;;  %v3658_v11 = vadd.f32 %v3976_v62, %v3644_v12  ;;  %v4133_v17 = vpop.f32.mrb[44].mxu1 }
 0x312   : > { %v4134_v20 = vpop.f32.mrb[45].mxu1 }
 0x313   : > { %3671 = vst [vmem:[%s5408_s21 + $0x20] sm:$0xff] %v3664_v3  ;;  %v3665_v45 = vmax.f32 %v3658_v11, 0.0  ;;  %v4135_v56 = vadd.f32 %v4134_v20, %v4133_v17  ;;  %v4136_v19 = vpop.f32.mrb[46].mxu1 }
 0x314   : > { %v4137_v24 = vpop.f32.mrb[47].mxu1 }
 0x315   : > { %3672 = vst [vmem:[%s5408_s21 + $0x28] sm:$0xff] %v3665_v45  ;;  %v3645_v29 = vadd.f32 %v4135_v56, %v3105_v52 }
 0x317   : > { %v3659_v58 = vadd.f32 %v3976_v62, %v3645_v29 }
 0x319   : > { %v3666_v21 = vmax.f32 %v3659_v58, 0.0 }
 0x31b   : > { %3673 = vst [vmem:[%s5408_s21 + $0x30] sm:$0x1] %v3666_v21 }
 0x31c PF: > { %s15_s18 = sadd.s32 1, %s4253_s18  }
 0x31d   : > { %p12_p4 = scmp.ge.s32.totalorder %s15_s18, 4  }
 0x31f   :  { %14 = sbr.rel (!%p12_p4) target bundleno = 1 (0x1), region = 73 }

</bundles_post_ra>
